<compile_context>
chip_gen: v7x
topology: tpu7x:2x2x1
jax: 0.10.0
libtpu: 0.0.40
codegen_flags: <defaults>
</compile_context>

<pallas_src>
import jax
import jax.numpy as jnp
from jax import lax
from jax.experimental import pallas as pl
from jax.experimental.pallas import tpu as pltpu

_SQRT_HALF = 0.7071067811865476


def _erf(z):
    # Abramowitz & Stegun 7.1.26 polynomial (|err| < 1.5e-7): exact-GELU
    # fidelity (PyTorch nn.GELU default is erf-based) using only ops that are
    # guaranteed to lower in Mosaic (exp / mul / add / select).
    a1, a2, a3, a4, a5 = (0.254829592, -0.284496736, 1.421413741,
                          -1.453152027, 1.061405429)
    p = 0.3275911
    sign = jnp.where(z >= 0.0, 1.0, -1.0)
    az = jnp.abs(z)
    t = pl.reciprocal(1.0 + p * az, approx=True)   # EUP slot, not VALU divide
    poly = ((((a5 * t + a4) * t + a3) * t + a2) * t + a1) * t
    return sign * (1.0 - poly * jnp.exp(-az * az))


def _gelu(x):
    return 0.5 * x * (1.0 + _erf(x * _SQRT_HALF))


def _make_kernel(num_encoders, eps):
    def kernel(x_ref, g2_ref, be2_ref, w1_ref, b1_ref, w2_ref, b2_ref, out_ref):
        x = x_ref[0]                                     # (C, TILE_S) f32
        for e in range(num_encoders):                    # static unroll
            # --- LayerNorm (norm2) over the channel (sublane) axis ---------
            mu = jnp.mean(x, axis=0, keepdims=True)
            xc = x - mu
            var = jnp.mean(xc * xc, axis=0, keepdims=True)
            xn = xc * lax.rsqrt(var + eps)
            xn = xn * g2_ref[e] + be2_ref[e]             # (C, 1) broadcast
            # --- MLP: fc1 -> GELU -> fc2 (bf16 MXU operands, f32 acc) ------
            h = jnp.dot(w1_ref[e].astype(jnp.bfloat16),
                        xn.astype(jnp.bfloat16),
                        preferred_element_type=jnp.float32) + b1_ref[e]
            h = _gelu(h)
            y = jnp.dot(w2_ref[e].astype(jnp.bfloat16),
                        h.astype(jnp.bfloat16),
                        preferred_element_type=jnp.float32) + b2_ref[e]
            # --- residual ----------------------------------------------------
            x = x + y
        out_ref[0] = x.astype(out_ref.dtype)

    return kernel


def transformer_block_pallas(x, enc_params, *, eps=1e-5, tile_s=128):
    """x: (B, C, H, W) f32.

    enc_params (stacked over encoders):
      gamma2 (E, C), beta2 (E, C), w1 (E, hidden, C), b1 (E, hidden),
      w2 (E, C, hidden), b2 (E, C)
    """
    gamma2, beta2, w1, b1, w2, b2 = enc_params
    n, c, h, w = x.shape
    num_encoders, hidden, _ = w1.shape
    s = h * w
    s_pad = pl.cdiv(s, tile_s) * tile_s                  # lane-dense blocks

    xf = x.reshape(n, c, s)
    if s_pad != s:
        # Padded token columns are processed independently (per-token LN+MLP
        # never mixes tokens) and sliced off afterwards -- no masking needed.
        xf = jnp.pad(xf, ((0, 0), (0, 0), (0, s_pad - s)))

    # Column vectors so per-channel params broadcast along the lane axis.
    g2c = gamma2[:, :, None]
    be2c = beta2[:, :, None]
    b1c = b1[:, :, None]
    b2c = b2[:, :, None]

    def full_spec(arr):
        return pl.BlockSpec(arr.shape, lambda b, j: (0,) * arr.ndim)

    n_tok = n * s_pad
    cost = pl.CostEstimate(
        flops=int(4 * n_tok * c * hidden * num_encoders),
        transcendentals=int(n_tok * hidden * num_encoders),
        bytes_accessed=int(2 * xf.size * 4
                           + 4 * sum(p.size for p in enc_params)),
    )

    kernel = _make_kernel(num_encoders, eps)

    out = pl.pallas_call(
        kernel,
        out_shape=jax.ShapeDtypeStruct((n, c, s_pad), x.dtype),
        grid=(n, s_pad // tile_s),
        in_specs=[
            pl.BlockSpec((1, c, tile_s), lambda b, j: (b, 0, j)),
            full_spec(g2c), full_spec(be2c),
            full_spec(w1), full_spec(b1c),
            full_spec(w2), full_spec(b2c),
        ],
        out_specs=pl.BlockSpec((1, c, tile_s), lambda b, j: (b, 0, j)),
        compiler_params=pltpu.CompilerParams(
            dimension_semantics=("parallel", "parallel"),
            vmem_limit_bytes=32 * 1024 * 1024),
        cost_estimate=cost,
    )(xf, g2c, be2c, w1, b1c, w2, b2c)

    if s_pad != s:
        out = out[:, :, :s]
    return out.reshape(n, c, h, w)


def transformer_block_ref(x, enc_params, *, eps=1e-5):
    """Pure-JAX reference mirroring the PyTorch forward (f32, exact GELU)."""
    gamma2, beta2, w1, b1, w2, b2 = enc_params
    n, c, h, w = x.shape
    s = h * w
    t = jnp.transpose(x.reshape(n, c, s), (2, 0, 1))     # (S, B, C)
    for e in range(w1.shape[0]):
        mu = jnp.mean(t, axis=-1, keepdims=True)
        var = jnp.mean((t - mu) ** 2, axis=-1, keepdims=True)
        xn = (t - mu) / jnp.sqrt(var + eps) * gamma2[e] + beta2[e]
        hdn = jax.nn.gelu(jnp.dot(xn, w1[e].T) + b1[e], approximate=False)
        t = t + jnp.dot(hdn, w2[e].T) + b2[e]
    return jnp.transpose(t, (1, 2, 0)).reshape(n, c, h, w)


if __name__ == "__main__":
    # TransformerBlock(in_channels=32, out_channels=32, num_heads=4,
    #                  num_encoders=2, mlp_ratio=2, dropout_ratio=0.0)
    # conv == Identity (in == out); self.linear / norm1 are unused by forward.
    # TODO(synk): ConvModule 1x1-conv branch (in_channels != out_channels) is
    # not defined in the spec and therefore not implemented.
    B, C, H, W = 2, 32, 16, 16
    num_encoders = 2
    mlp_ratio = 2
    hidden = C * mlp_ratio

    root = jax.random.PRNGKey(0)
    keys = jax.random.split(root, 1 + 6 * num_encoders)
    kit = iter(range(1, len(keys)))

    x = jax.random.normal(keys[0], (B, C, H, W), dtype=jnp.float32)

    gamma2 = jnp.stack([1.0 + 0.1 * jax.random.normal(keys[next(kit)], (C,), jnp.float32)
                        for _ in range(num_encoders)])
    beta2 = jnp.stack([0.1 * jax.random.normal(keys[next(kit)], (C,), jnp.float32)
                       for _ in range(num_encoders)])
    w1 = jnp.stack([0.1 * jax.random.normal(keys[next(kit)], (hidden, C), jnp.float32)
                    for _ in range(num_encoders)])
    b1 = jnp.stack([0.1 * jax.random.normal(keys[next(kit)], (hidden,), jnp.float32)
                    for _ in range(num_encoders)])
    w2 = jnp.stack([0.1 * jax.random.normal(keys[next(kit)], (C, hidden), jnp.float32)
                    for _ in range(num_encoders)])
    b2 = jnp.stack([0.1 * jax.random.normal(keys[next(kit)], (C,), jnp.float32)
                    for _ in range(num_encoders)])

    enc_params = (gamma2, beta2, w1, b1, w2, b2)

    out = transformer_block_pallas(x, enc_params)
    out = jax.block_until_ready(out)

    ref = transformer_block_ref(x, enc_params)

    assert out.shape == (B, C, H, W)
    # bf16 MXU operands + approximate reciprocal in the erf polynomial loosen
    # the attainable tolerance relative to the pure-f32 reference.
    assert jnp.allclose(out, ref, atol=5e-2, rtol=5e-2), "mismatch vs reference"
    print("KERNEL_OK")
</pallas_src>

<mosaic_0001>
module attributes {stable_mosaic.version = 11 : i64} {
  func.func @kernel(%arg0: i32, %arg1: i32, %arg2: memref<1x32x128xf32, #tpu.memory_space<vmem>>, %arg3: memref<2x32x1xf32, #tpu.memory_space<vmem>>, %arg4: memref<2x32x1xf32, #tpu.memory_space<vmem>>, %arg5: memref<2x64x32xf32, #tpu.memory_space<vmem>>, %arg6: memref<2x64x1xf32, #tpu.memory_space<vmem>>, %arg7: memref<2x32x64xf32, #tpu.memory_space<vmem>>, %arg8: memref<2x32x1xf32, #tpu.memory_space<vmem>>, %arg9: memref<1x32x128xf32, #tpu.memory_space<vmem>>) attributes {dimension_semantics = [#tpu.dimension_semantics<parallel>, #tpu.dimension_semantics<parallel>], iteration_bounds = array<i64: 2, 2>, scalar_prefetch = 0 : i64, scratch_operands = 0 : i64, tpu.core_type = #tpu.core_type<tc>, window_params = [{transform_indices = @transform_0, window_bounds = array<i64: 1, 32, 128>}, {pipeline_mode = #tpu.pipeline_mode<synchronous>, transform_indices = @transform_1, window_bounds = array<i64: 2, 32, 1>}, {pipeline_mode = #tpu.pipeline_mode<synchronous>, transform_indices = @transform_2, window_bounds = array<i64: 2, 32, 1>}, {pipeline_mode = #tpu.pipeline_mode<synchronous>, transform_indices = @transform_3, window_bounds = array<i64: 2, 64, 32>}, {pipeline_mode = #tpu.pipeline_mode<synchronous>, transform_indices = @transform_4, window_bounds = array<i64: 2, 64, 1>}, {pipeline_mode = #tpu.pipeline_mode<synchronous>, transform_indices = @transform_5, window_bounds = array<i64: 2, 32, 64>}, {pipeline_mode = #tpu.pipeline_mode<synchronous>, transform_indices = @transform_6, window_bounds = array<i64: 2, 32, 1>}, {transform_indices = @transform_7, window_bounds = array<i64: 1, 32, 128>}]} {
    %c0 = arith.constant 0 : index
    %c0_0 = arith.constant 0 : index
    %c0_1 = arith.constant 0 : index
    %0 = vector.load %arg2[%c0, %c0_0, %c0_1] : memref<1x32x128xf32, #tpu.memory_space<vmem>>, vector<1x32x128xf32>
    %1 = vector.shape_cast %0 : vector<1x32x128xf32> to vector<32x128xf32>
    %cst = arith.constant dense<0.000000e+00> : vector<128xf32>
    %2 = vector.multi_reduction <add>, %1, %cst [0] : vector<32x128xf32> to vector<128xf32>
    %3 = vector.shape_cast %2 : vector<128xf32> to vector<1x128xf32>
    %cst_2 = arith.constant 3.200000e+01 : f32
    %4 = vector.broadcast %cst_2 : f32 to vector<1x128xf32>
    %5 = arith.divf %3, %4 : vector<1x128xf32>
    %6 = vector.broadcast %5 : vector<1x128xf32> to vector<32x128xf32>
    %7 = arith.subf %1, %6 : vector<32x128xf32>
    %8 = arith.mulf %7, %7 : vector<32x128xf32>
    %cst_3 = arith.constant dense<0.000000e+00> : vector<128xf32>
    %9 = vector.multi_reduction <add>, %8, %cst_3 [0] : vector<32x128xf32> to vector<128xf32>
    %10 = vector.shape_cast %9 : vector<128xf32> to vector<1x128xf32>
    %cst_4 = arith.constant 3.200000e+01 : f32
    %11 = vector.broadcast %cst_4 : f32 to vector<1x128xf32>
    %12 = arith.divf %10, %11 : vector<1x128xf32>
    %cst_5 = arith.constant 9.99999974E-6 : f32
    %13 = vector.broadcast %cst_5 : f32 to vector<1x128xf32>
    %14 = arith.addf %12, %13 : vector<1x128xf32>
    %15 = math.rsqrt %14 : vector<1x128xf32>
    %16 = vector.broadcast %15 : vector<1x128xf32> to vector<32x128xf32>
    %17 = arith.mulf %7, %16 : vector<32x128xf32>
    %c0_6 = arith.constant 0 : index
    %c0_7 = arith.constant 0 : index
    %c0_8 = arith.constant 0 : index
    %18 = vector.load %arg3[%c0_6, %c0_7, %c0_8] : memref<2x32x1xf32, #tpu.memory_space<vmem>>, vector<1x32x1xf32>
    %19 = vector.shape_cast %18 : vector<1x32x1xf32> to vector<32x1xf32>
    %20 = vector.broadcast %19 : vector<32x1xf32> to vector<32x128xf32>
    %21 = arith.mulf %17, %20 : vector<32x128xf32>
    %c0_9 = arith.constant 0 : index
    %c0_10 = arith.constant 0 : index
    %c0_11 = arith.constant 0 : index
    %22 = vector.load %arg4[%c0_9, %c0_10, %c0_11] : memref<2x32x1xf32, #tpu.memory_space<vmem>>, vector<1x32x1xf32>
    %23 = vector.shape_cast %22 : vector<1x32x1xf32> to vector<32x1xf32>
    %24 = vector.broadcast %23 : vector<32x1xf32> to vector<32x128xf32>
    %25 = arith.addf %21, %24 : vector<32x128xf32>
    %c0_12 = arith.constant 0 : index
    %c0_13 = arith.constant 0 : index
    %c0_14 = arith.constant 0 : index
    %26 = vector.load %arg5[%c0_12, %c0_13, %c0_14] : memref<2x64x32xf32, #tpu.memory_space<vmem>>, vector<1x64x32xf32>
    %27 = vector.shape_cast %26 : vector<1x64x32xf32> to vector<64x32xf32>
    %28 = arith.truncf %27 : vector<64x32xf32> to vector<64x32xbf16>
    %29 = arith.truncf %25 : vector<32x128xf32> to vector<32x128xbf16>
    %cst_15 = arith.constant dense<0.000000e+00> : vector<64x128xf32>
    %30 = tpu.matmul %28, %29, %cst_15 {dimension_numbers = #tpu.dot_dimension_numbers<[1], [0], [0], [1], [0, 0, 1, 1], [], []>} : vector<64x32xbf16>, vector<32x128xbf16>, vector<64x128xf32> -> vector<64x128xf32>
    %c0_16 = arith.constant 0 : index
    %c0_17 = arith.constant 0 : index
    %c0_18 = arith.constant 0 : index
    %31 = vector.load %arg6[%c0_16, %c0_17, %c0_18] : memref<2x64x1xf32, #tpu.memory_space<vmem>>, vector<1x64x1xf32>
    %32 = vector.shape_cast %31 : vector<1x64x1xf32> to vector<64x1xf32>
    %33 = vector.broadcast %32 : vector<64x1xf32> to vector<64x128xf32>
    %34 = arith.addf %30, %33 : vector<64x128xf32>
    %cst_19 = arith.constant 5.000000e-01 : f32
    %35 = vector.broadcast %cst_19 : f32 to vector<64x128xf32>
    %36 = arith.mulf %35, %34 : vector<64x128xf32>
    %cst_20 = arith.constant 0.707106769 : f32
    %37 = vector.broadcast %cst_20 : f32 to vector<64x128xf32>
    %38 = arith.mulf %34, %37 : vector<64x128xf32>
    %cst_21 = arith.constant 0.000000e+00 : f32
    %39 = vector.broadcast %cst_21 : f32 to vector<64x128xf32>
    %40 = arith.cmpf oge, %38, %39 : vector<64x128xf32>
    %cst_22 = arith.constant 1.000000e+00 : f32
    %cst_23 = arith.constant -1.000000e+00 : f32
    %41 = vector.broadcast %cst_22 : f32 to vector<64x128xf32>
    %42 = vector.broadcast %cst_23 : f32 to vector<64x128xf32>
    %43 = arith.select %40, %41, %42 : vector<64x128xi1>, vector<64x128xf32>
    %44 = math.absf %38 : vector<64x128xf32>
    %cst_24 = arith.constant 0.327591091 : f32
    %45 = vector.broadcast %cst_24 : f32 to vector<64x128xf32>
    %46 = arith.mulf %45, %44 : vector<64x128xf32>
    %cst_25 = arith.constant 1.000000e+00 : f32
    %47 = vector.broadcast %cst_25 : f32 to vector<64x128xf32>
    %48 = arith.addf %47, %46 : vector<64x128xf32>
    %49 = tpu.reciprocal %48 {approx = true} : vector<64x128xf32> -> vector<64x128xf32>
    %cst_26 = arith.constant 1.06140542 : f32
    %50 = vector.broadcast %cst_26 : f32 to vector<64x128xf32>
    %51 = arith.mulf %50, %49 : vector<64x128xf32>
    %cst_27 = arith.constant -1.45315206 : f32
    %52 = vector.broadcast %cst_27 : f32 to vector<64x128xf32>
    %53 = arith.addf %51, %52 : vector<64x128xf32>
    %54 = arith.mulf %53, %49 : vector<64x128xf32>
    %cst_28 = arith.constant 1.42141378 : f32
    %55 = vector.broadcast %cst_28 : f32 to vector<64x128xf32>
    %56 = arith.addf %54, %55 : vector<64x128xf32>
    %57 = arith.mulf %56, %49 : vector<64x128xf32>
    %cst_29 = arith.constant -0.284496725 : f32
    %58 = vector.broadcast %cst_29 : f32 to vector<64x128xf32>
    %59 = arith.addf %57, %58 : vector<64x128xf32>
    %60 = arith.mulf %59, %49 : vector<64x128xf32>
    %cst_30 = arith.constant 0.254829586 : f32
    %61 = vector.broadcast %cst_30 : f32 to vector<64x128xf32>
    %62 = arith.addf %60, %61 : vector<64x128xf32>
    %63 = arith.mulf %62, %49 : vector<64x128xf32>
    %cst_31 = arith.constant 0.000000e+00 : f32
    %64 = vector.broadcast %cst_31 : f32 to vector<64x128xf32>
    %65 = arith.subf %64, %44 : vector<64x128xf32>
    %66 = arith.mulf %65, %44 : vector<64x128xf32>
    %67 = math.exp %66 : vector<64x128xf32>
    %68 = arith.mulf %63, %67 : vector<64x128xf32>
    %cst_32 = arith.constant 1.000000e+00 : f32
    %69 = vector.broadcast %cst_32 : f32 to vector<64x128xf32>
    %70 = arith.subf %69, %68 : vector<64x128xf32>
    %71 = arith.mulf %43, %70 : vector<64x128xf32>
    %cst_33 = arith.constant 1.000000e+00 : f32
    %72 = vector.broadcast %cst_33 : f32 to vector<64x128xf32>
    %73 = arith.addf %72, %71 : vector<64x128xf32>
    %74 = arith.mulf %36, %73 : vector<64x128xf32>
    %c0_34 = arith.constant 0 : index
    %c0_35 = arith.constant 0 : index
    %c0_36 = arith.constant 0 : index
    %75 = vector.load %arg7[%c0_34, %c0_35, %c0_36] : memref<2x32x64xf32, #tpu.memory_space<vmem>>, vector<1x32x64xf32>
    %76 = vector.shape_cast %75 : vector<1x32x64xf32> to vector<32x64xf32>
    %77 = arith.truncf %76 : vector<32x64xf32> to vector<32x64xbf16>
    %78 = arith.truncf %74 : vector<64x128xf32> to vector<64x128xbf16>
    %cst_37 = arith.constant dense<0.000000e+00> : vector<32x128xf32>
    %79 = tpu.matmul %77, %78, %cst_37 {dimension_numbers = #tpu.dot_dimension_numbers<[1], [0], [0], [1], [0, 0, 1, 1], [], []>} : vector<32x64xbf16>, vector<64x128xbf16>, vector<32x128xf32> -> vector<32x128xf32>
    %c0_38 = arith.constant 0 : index
    %c0_39 = arith.constant 0 : index
    %c0_40 = arith.constant 0 : index
    %80 = vector.load %arg8[%c0_38, %c0_39, %c0_40] : memref<2x32x1xf32, #tpu.memory_space<vmem>>, vector<1x32x1xf32>
    %81 = vector.shape_cast %80 : vector<1x32x1xf32> to vector<32x1xf32>
    %82 = vector.broadcast %81 : vector<32x1xf32> to vector<32x128xf32>
    %83 = arith.addf %79, %82 : vector<32x128xf32>
    %84 = arith.addf %1, %83 : vector<32x128xf32>
    %cst_41 = arith.constant dense<0.000000e+00> : vector<128xf32>
    %85 = vector.multi_reduction <add>, %84, %cst_41 [0] : vector<32x128xf32> to vector<128xf32>
    %86 = vector.shape_cast %85 : vector<128xf32> to vector<1x128xf32>
    %cst_42 = arith.constant 3.200000e+01 : f32
    %87 = vector.broadcast %cst_42 : f32 to vector<1x128xf32>
    %88 = arith.divf %86, %87 : vector<1x128xf32>
    %89 = vector.broadcast %88 : vector<1x128xf32> to vector<32x128xf32>
    %90 = arith.subf %84, %89 : vector<32x128xf32>
    %91 = arith.mulf %90, %90 : vector<32x128xf32>
    %cst_43 = arith.constant dense<0.000000e+00> : vector<128xf32>
    %92 = vector.multi_reduction <add>, %91, %cst_43 [0] : vector<32x128xf32> to vector<128xf32>
    %93 = vector.shape_cast %92 : vector<128xf32> to vector<1x128xf32>
    %cst_44 = arith.constant 3.200000e+01 : f32
    %94 = vector.broadcast %cst_44 : f32 to vector<1x128xf32>
    %95 = arith.divf %93, %94 : vector<1x128xf32>
    %cst_45 = arith.constant 9.99999974E-6 : f32
    %96 = vector.broadcast %cst_45 : f32 to vector<1x128xf32>
    %97 = arith.addf %95, %96 : vector<1x128xf32>
    %98 = math.rsqrt %97 : vector<1x128xf32>
    %99 = vector.broadcast %98 : vector<1x128xf32> to vector<32x128xf32>
    %100 = arith.mulf %90, %99 : vector<32x128xf32>
    %c1 = arith.constant 1 : index
    %c0_46 = arith.constant 0 : index
    %c0_47 = arith.constant 0 : index
    %101 = vector.load %arg3[%c1, %c0_46, %c0_47] : memref<2x32x1xf32, #tpu.memory_space<vmem>>, vector<1x32x1xf32>
    %102 = vector.shape_cast %101 : vector<1x32x1xf32> to vector<32x1xf32>
    %103 = vector.broadcast %102 : vector<32x1xf32> to vector<32x128xf32>
    %104 = arith.mulf %100, %103 : vector<32x128xf32>
    %c1_48 = arith.constant 1 : index
    %c0_49 = arith.constant 0 : index
    %c0_50 = arith.constant 0 : index
    %105 = vector.load %arg4[%c1_48, %c0_49, %c0_50] : memref<2x32x1xf32, #tpu.memory_space<vmem>>, vector<1x32x1xf32>
    %106 = vector.shape_cast %105 : vector<1x32x1xf32> to vector<32x1xf32>
    %107 = vector.broadcast %106 : vector<32x1xf32> to vector<32x128xf32>
    %108 = arith.addf %104, %107 : vector<32x128xf32>
    %c1_51 = arith.constant 1 : index
    %c0_52 = arith.constant 0 : index
    %c0_53 = arith.constant 0 : index
    %109 = vector.load %arg5[%c1_51, %c0_52, %c0_53] : memref<2x64x32xf32, #tpu.memory_space<vmem>>, vector<1x64x32xf32>
    %110 = vector.shape_cast %109 : vector<1x64x32xf32> to vector<64x32xf32>
    %111 = arith.truncf %110 : vector<64x32xf32> to vector<64x32xbf16>
    %112 = arith.truncf %108 : vector<32x128xf32> to vector<32x128xbf16>
    %cst_54 = arith.constant dense<0.000000e+00> : vector<64x128xf32>
    %113 = tpu.matmul %111, %112, %cst_54 {dimension_numbers = #tpu.dot_dimension_numbers<[1], [0], [0], [1], [0, 0, 1, 1], [], []>} : vector<64x32xbf16>, vector<32x128xbf16>, vector<64x128xf32> -> vector<64x128xf32>
    %c1_55 = arith.constant 1 : index
    %c0_56 = arith.constant 0 : index
    %c0_57 = arith.constant 0 : index
    %114 = vector.load %arg6[%c1_55, %c0_56, %c0_57] : memref<2x64x1xf32, #tpu.memory_space<vmem>>, vector<1x64x1xf32>
    %115 = vector.shape_cast %114 : vector<1x64x1xf32> to vector<64x1xf32>
    %116 = vector.broadcast %115 : vector<64x1xf32> to vector<64x128xf32>
    %117 = arith.addf %113, %116 : vector<64x128xf32>
    %cst_58 = arith.constant 5.000000e-01 : f32
    %118 = vector.broadcast %cst_58 : f32 to vector<64x128xf32>
    %119 = arith.mulf %118, %117 : vector<64x128xf32>
    %cst_59 = arith.constant 0.707106769 : f32
    %120 = vector.broadcast %cst_59 : f32 to vector<64x128xf32>
    %121 = arith.mulf %117, %120 : vector<64x128xf32>
    %cst_60 = arith.constant 0.000000e+00 : f32
    %122 = vector.broadcast %cst_60 : f32 to vector<64x128xf32>
    %123 = arith.cmpf oge, %121, %122 : vector<64x128xf32>
    %cst_61 = arith.constant 1.000000e+00 : f32
    %cst_62 = arith.constant -1.000000e+00 : f32
    %124 = vector.broadcast %cst_61 : f32 to vector<64x128xf32>
    %125 = vector.broadcast %cst_62 : f32 to vector<64x128xf32>
    %126 = arith.select %123, %124, %125 : vector<64x128xi1>, vector<64x128xf32>
    %127 = math.absf %121 : vector<64x128xf32>
    %cst_63 = arith.constant 0.327591091 : f32
    %128 = vector.broadcast %cst_63 : f32 to vector<64x128xf32>
    %129 = arith.mulf %128, %127 : vector<64x128xf32>
    %cst_64 = arith.constant 1.000000e+00 : f32
    %130 = vector.broadcast %cst_64 : f32 to vector<64x128xf32>
    %131 = arith.addf %130, %129 : vector<64x128xf32>
    %132 = tpu.reciprocal %131 {approx = true} : vector<64x128xf32> -> vector<64x128xf32>
    %cst_65 = arith.constant 1.06140542 : f32
    %133 = vector.broadcast %cst_65 : f32 to vector<64x128xf32>
    %134 = arith.mulf %133, %132 : vector<64x128xf32>
    %cst_66 = arith.constant -1.45315206 : f32
    %135 = vector.broadcast %cst_66 : f32 to vector<64x128xf32>
    %136 = arith.addf %134, %135 : vector<64x128xf32>
    %137 = arith.mulf %136, %132 : vector<64x128xf32>
    %cst_67 = arith.constant 1.42141378 : f32
    %138 = vector.broadcast %cst_67 : f32 to vector<64x128xf32>
    %139 = arith.addf %137, %138 : vector<64x128xf32>
    %140 = arith.mulf %139, %132 : vector<64x128xf32>
    %cst_68 = arith.constant -0.284496725 : f32
    %141 = vector.broadcast %cst_68 : f32 to vector<64x128xf32>
    %142 = arith.addf %140, %141 : vector<64x128xf32>
    %143 = arith.mulf %142, %132 : vector<64x128xf32>
    %cst_69 = arith.constant 0.254829586 : f32
    %144 = vector.broadcast %cst_69 : f32 to vector<64x128xf32>
    %145 = arith.addf %143, %144 : vector<64x128xf32>
    %146 = arith.mulf %145, %132 : vector<64x128xf32>
    %cst_70 = arith.constant 0.000000e+00 : f32
    %147 = vector.broadcast %cst_70 : f32 to vector<64x128xf32>
    %148 = arith.subf %147, %127 : vector<64x128xf32>
    %149 = arith.mulf %148, %127 : vector<64x128xf32>
    %150 = math.exp %149 : vector<64x128xf32>
    %151 = arith.mulf %146, %150 : vector<64x128xf32>
    %cst_71 = arith.constant 1.000000e+00 : f32
    %152 = vector.broadcast %cst_71 : f32 to vector<64x128xf32>
    %153 = arith.subf %152, %151 : vector<64x128xf32>
    %154 = arith.mulf %126, %153 : vector<64x128xf32>
    %cst_72 = arith.constant 1.000000e+00 : f32
    %155 = vector.broadcast %cst_72 : f32 to vector<64x128xf32>
    %156 = arith.addf %155, %154 : vector<64x128xf32>
    %157 = arith.mulf %119, %156 : vector<64x128xf32>
    %c1_73 = arith.constant 1 : index
    %c0_74 = arith.constant 0 : index
    %c0_75 = arith.constant 0 : index
    %158 = vector.load %arg7[%c1_73, %c0_74, %c0_75] : memref<2x32x64xf32, #tpu.memory_space<vmem>>, vector<1x32x64xf32>
    %159 = vector.shape_cast %158 : vector<1x32x64xf32> to vector<32x64xf32>
    %160 = arith.truncf %159 : vector<32x64xf32> to vector<32x64xbf16>
    %161 = arith.truncf %157 : vector<64x128xf32> to vector<64x128xbf16>
    %cst_76 = arith.constant dense<0.000000e+00> : vector<32x128xf32>
    %162 = tpu.matmul %160, %161, %cst_76 {dimension_numbers = #tpu.dot_dimension_numbers<[1], [0], [0], [1], [0, 0, 1, 1], [], []>} : vector<32x64xbf16>, vector<64x128xbf16>, vector<32x128xf32> -> vector<32x128xf32>
    %c1_77 = arith.constant 1 : index
    %c0_78 = arith.constant 0 : index
    %c0_79 = arith.constant 0 : index
    %163 = vector.load %arg8[%c1_77, %c0_78, %c0_79] : memref<2x32x1xf32, #tpu.memory_space<vmem>>, vector<1x32x1xf32>
    %164 = vector.shape_cast %163 : vector<1x32x1xf32> to vector<32x1xf32>
    %165 = vector.broadcast %164 : vector<32x1xf32> to vector<32x128xf32>
    %166 = arith.addf %162, %165 : vector<32x128xf32>
    %167 = arith.addf %84, %166 : vector<32x128xf32>
    %c0_80 = arith.constant 0 : index
    %c0_81 = arith.constant 0 : index
    %c0_82 = arith.constant 0 : index
    %168 = vector.load %arg9[%c0_80, %c0_81, %c0_82] : memref<1x32x128xf32, #tpu.memory_space<vmem>>, vector<1x32x128xf32>
    %169 = vector.shape_cast %168 : vector<1x32x128xf32> to vector<32x128xf32>
    %170 = vector.shape_cast %167 : vector<32x128xf32> to vector<1x32x128xf32>
    tpu.vector_store %arg9[%c0_80, %c0_81, %c0_82], %170 {strides = array<i32>} : memref<1x32x128xf32, #tpu.memory_space<vmem>>, vector<1x32x128xf32>,
    return
  }
  func.func @transform_0(%arg0: i32, %arg1: i32) -> (i32, i32, i32) {
    %c0_i32 = arith.constant 0 : i32
    %c0_i32_0 = arith.constant 0 : i32
    return %arg0, %c0_i32, %arg1 : i32, i32, i32
  }
  func.func @transform_1(%arg0: i32, %arg1: i32) -> (i32, i32, i32) {
    %c0_i32 = arith.constant 0 : i32
    %c0_i32_0 = arith.constant 0 : i32
    %c0_i32_1 = arith.constant 0 : i32
    %c0_i32_2 = arith.constant 0 : i32
    return %c0_i32, %c0_i32_0, %c0_i32_1 : i32, i32, i32
  }
  func.func @transform_2(%arg0: i32, %arg1: i32) -> (i32, i32, i32) {
    %c0_i32 = arith.constant 0 : i32
    %c0_i32_0 = arith.constant 0 : i32
    %c0_i32_1 = arith.constant 0 : i32
    %c0_i32_2 = arith.constant 0 : i32
    return %c0_i32, %c0_i32_0, %c0_i32_1 : i32, i32, i32
  }
  func.func @transform_3(%arg0: i32, %arg1: i32) -> (i32, i32, i32) {
    %c0_i32 = arith.constant 0 : i32
    %c0_i32_0 = arith.constant 0 : i32
    %c0_i32_1 = arith.constant 0 : i32
    %c0_i32_2 = arith.constant 0 : i32
    return %c0_i32, %c0_i32_0, %c0_i32_1 : i32, i32, i32
  }
  func.func @transform_4(%arg0: i32, %arg1: i32) -> (i32, i32, i32) {
    %c0_i32 = arith.constant 0 : i32
    %c0_i32_0 = arith.constant 0 : i32
    %c0_i32_1 = arith.constant 0 : i32
    %c0_i32_2 = arith.constant 0 : i32
    return %c0_i32, %c0_i32_0, %c0_i32_1 : i32, i32, i32
  }
  func.func @transform_5(%arg0: i32, %arg1: i32) -> (i32, i32, i32) {
    %c0_i32 = arith.constant 0 : i32
    %c0_i32_0 = arith.constant 0 : i32
    %c0_i32_1 = arith.constant 0 : i32
    %c0_i32_2 = arith.constant 0 : i32
    return %c0_i32, %c0_i32_0, %c0_i32_1 : i32, i32, i32
  }
  func.func @transform_6(%arg0: i32, %arg1: i32) -> (i32, i32, i32) {
    %c0_i32 = arith.constant 0 : i32
    %c0_i32_0 = arith.constant 0 : i32
    %c0_i32_1 = arith.constant 0 : i32
    %c0_i32_2 = arith.constant 0 : i32
    return %c0_i32, %c0_i32_0, %c0_i32_1 : i32, i32, i32
  }
  func.func @transform_7(%arg0: i32, %arg1: i32) -> (i32, i32, i32) {
    %c0_i32 = arith.constant 0 : i32
    %c0_i32_0 = arith.constant 0 : i32
    return %arg0, %c0_i32, %arg1 : i32, i32, i32
  }
}

</mosaic_0001>

<bundles_post_ra>
// kernel: tpu_custom_call.1
= control target key start
LH: loop header
LB: loop body
LE: loop exit
PB: predicated region body
PF: predicated region fallthrough
CT: control target
= control target key end

     0   :  { %12 = vsyncpa [#allocation4], 0  ;;  %s2618_s0 = inlined_call_operand.vmem [shape: f32[2,32,256], index: 0, kind: input, shape index: {}]   ;;  %s2619_s1 = inlined_call_operand.vmem [shape: f32[2,32,1], index: 1, kind: input, shape index: {}]   ;;  %s2620_s2 = inlined_call_operand.vmem [shape: f32[2,32,1], index: 2, kind: input, shape index: {}]   ;;  %s2621_s3 = inlined_call_operand.vmem [shape: f32[2,64,32], index: 3, kind: input, shape index: {}]   ;;  %s2622_s4 = inlined_call_operand.vmem [shape: f32[2,64,1], index: 4, kind: input, shape index: {}]   ;;  %s2623_s5 = inlined_call_operand.vmem [shape: f32[2,32,64], index: 5, kind: input, shape index: {}]   ;;  %s2624_s6 = inlined_call_operand.vmem [shape: f32[2,32,1], index: 6, kind: input, shape index: {}]   ;;  %s2625_s7 = inlined_call_operand.hbm [shape: f32[2,32,256], index: 7, kind: output, shape index: {}]  }
   0x1   :  { %14 = vsyncpa [#allocation4 + $0x1], 0  ;;  %s1936_s24 = smov 0   ;;  %s1938_s25 = smov 0  }
   0x2   :  { %s1940_s26 = smov 0   ;;  %s1942_s27 = smov 0  }
   0x3   :  { %s1944_s28 = smov 0   ;;  %s1946_s29 = smov 0  }
   0x4   :  { %s1948_s30 = smov 0   ;;  %s1950_s8 = smov 0  }
   0x5 LB: > { %s1517_s9 = sadd.s32 4294967295, %s1888_s8   ;;  %s1518_s10 = sadd.s32 4294967294, %s1888_s8   ;;  %s1888_s8 = sphi %s1950_s8, %s20_s8   ;;  %s1884_s30 = sphi %s1948_s30, %s2640_s30   ;;  %s1880_s29 = sphi %s1946_s29, %s2639_s29   ;;  %s1876_s28 = sphi %s1944_s28, %s2638_s28   ;;  %s1872_s27 = sphi %s1942_s27, %s2637_s27   ;;  %s1868_s26 = sphi %s1940_s26, %s2636_s26   ;;  %s1864_s25 = sphi %s1938_s25, %s2635_s25   ;;  %s1860_s24 = sphi %s1936_s24, %s2634_s24  }
   0x6   : > { %s29_s11 = sadd.s32 1, %s1880_s29  ;;  %s32_s12 = sadd.s32 1, %s1884_s30 }
   0x7   : > { %p30_p0 = scmp.ge.s32.totalorder %s29_s11, 2  ;;  %p48_p1 = scmp.ne.s32.totalorder %s1868_s26, %s1864_s25 }
   0x8   : > { %p49_p2 = scmp.eq.s32.totalorder %s1888_s8, 0  ;;  %p206_p5 = scmp.eq.s32.totalorder %s1517_s9, 3 }
   0x9   : > { %s2642_s11 = smov (%p30_p0, %s29_s11), 0  ;;  %s2644_s12 = smov (!%p30_p0, %s32_s12), %s1884_s30 }
   0xa   : > { %s37_s13 = ssub.s32 %s1880_s29, %s2642_s11  ;;  %p1988_p3 = por %p49_p2, %p48_p1 }
   0xb   : > { %p34_p4 = scmp.ge.s32.totalorder %s2644_s12, 2  ;;  %p211_p6 = scmp.ne.s32.totalorder %s1864_s25, %s1860_s24 }
   0xc   : > { %p212_p7 = scmp.eq.s32.totalorder %s1518_s10, 3  ;;  %p1996_p8 = por %p206_p5, %p48_p1 }
   0xd   : > { %s2646_s12 = smov (%p34_p4, %s2644_s12), 0  ;;  %s41_s19 = sadd.s32 1, %s1868_s26 }
   0xe   : > { %2629 = sst [smem:[#allocation6_spill]] %s2646_s12  ;;  %p2000_p9 = por %p212_p7, %p211_p6 }
   0xf   : > { %s36_s17 = ssub.s32 %s1884_s30, %s2646_s12  ;;  %p1520_p11 = scmp.ge.s32.totalorder %s1888_s8, 4 }
  0x10   : > { %s38_s18 = sor.u32 %s37_s13, %s36_s17 }
  0x11   : > { %p39_p10 = scmp.eq.s32.totalorder %s38_s18, 0  ;;  %246 = sbr.rel (%p1520_p11) target bundleno = 32 (0x20), region = 40 }
  0x13   : > { %s2008_s20 = scalar_select %p39_p10, %s1868_s26, %s41_s19  }
  0x18   : > { %249 = sbr.rel (!%p1988_p3) target bundleno = 32 (0x20), region = 44  ;;  %s251_s21 = sand.u32 (%p1988_p3), 1, %s1868_s26  }
  0x19   : > { %s1522_s22 = sshll.u32 (%p1988_p3), %s1884_s30, 3  ;;  %s1521_s23 = sshll.u32 (%p1988_p3), %s251_s21, 5 }
  0x1a   : > { %s255_s9 = sadd.s32 (%p1988_p3), %s1880_s29, %s1522_s22  ;;  %s253_s18 = scalar_lea.vmem (%p1988_p3), [#allocation2], %s1521_s23 }
  0x1b   : > { %s1523_s10 = sshll.u32 (%p1988_p3), %s255_s9, 3 }
  0x1c   : > { %s257_s17 = scalar_lea.vmem (%p1988_p3), %s2618_s0, %s1523_s10 }
  0x1d   : > { %v291_v0 = vld [vmem:[%s257_s17] sm:$0xff] (%p1988_p3)  ;;  %v293_v1 = vld [vmem:[%s257_s17 + $0x10] sm:$0xff] (%p1988_p3) }
  0x1e   : > { %v295_v2 = vld [vmem:[%s257_s17 + $0x20] sm:$0xff] (%p1988_p3)  ;;  %292 = vst [vmem:[%s253_s18] sm:$0xff] (%p1988_p3), %v291_v0  ;;  %294 = vst [vmem:[%s253_s18 + $0x8] sm:$0xff] (%p1988_p3), %v293_v1  ;;  %v297_v3 = vld [vmem:[%s257_s17 + $0x30] sm:$0xff] (%p1988_p3) }
  0x1f   : > { %296 = vst [vmem:[%s253_s18 + $0x10] sm:$0xff] %v295_v2  ;;  %298 = vst [vmem:[%s253_s18 + $0x18] sm:$0xff] %v297_v3 }
  0x20 PF: > { %p1524_p12 = scmp.ge.s32.totalorder %s1888_s8, 1  ;;  %p303_p13 = scmp.lt.s32.totalorder %s1888_s8, 5 }
  0x22   : > { %p304_p0 = pnand %p1524_p12, %p303_p13 }
  0x23   : > { %v409_v4 = vld [vmem:[%s2620_s2] sm:$0xff] (!%p304_p0)  ;;  %v1890_v6 = vmov (!%p304_p0), 0   ;;  %v410_v7 = vld [vmem:[%s2620_s2 + $0x8] sm:$0xff] (!%p304_p0)  ;;  %v384_v9 = vld [vmem:[%s2619_s1 + $0x18] sm:$0xff] (!%p304_p0)  ;;  %s2627_s23 = sand.u32 (!%p304_p0), 1, %s1864_s25   ;;  %vm499_vm0 = vcmask (!%p304_p0), 261120  }
  0x24   : > { %307 = sbr.rel (%p304_p0) target bundleno = 1294 (0x50e), region = 82  ;;  %v381_v5 = vld [vmem:[%s2619_s1] sm:$0xff] (!%p304_p0)  ;;  %1725 = vset.pattern.permute.xlu1 (!%p304_p0), %v1890_v6  ;;  %1724 = vset.pattern.permute.xlu0 (!%p304_p0), %v1890_v6  ;;  %v382_v8 = vld [vmem:[%s2619_s1 + $0x8] sm:$0xff] (!%p304_p0)  ;;  %v383_v10 = vld [vmem:[%s2619_s1 + $0x10] sm:$0xff] (!%p304_p0)  ;;  %s2048_s9 = sshll.u32 (!%p304_p0), %s2627_s23, 5  ;;  %vm819_vm1 = vcmask (!%p304_p0), 523264  }
  0x25   : > { %415 = vperm.xlu1 (!%p304_p0), %1725, %v409_v4   ;;  %387 = vperm.xlu0 (!%p304_p0), %1724, %v381_v5   ;;  %v412_v11 = vld [vmem:[%s2620_s2 + $0x18] sm:$0xff] (!%p304_p0)  ;;  %v411_v12 = vld [vmem:[%s2620_s2 + $0x10] sm:$0xff] (!%p304_p0)  ;;  %v452_v13 = vld [vmem:[%s2622_s4 + $0x8] sm:$0xff] (!%p304_p0)  ;;  %s312_s17 = scalar_lea.vmem (!%p304_p0), [#allocation2], %s2048_s9  ;;  %s1572_s14 = sshll.u32 (!%p304_p0), %s1876_s28, 3 }
  0x26   : > { %v451_v14 = vld [vmem:[%s2622_s4] sm:$0xff] (!%p304_p0)  ;;  %v438_v16 = vld [vmem:[%s2621_s3 + $0x8] sm:$0xff] (!%p304_p0)  ;;  %v454_v17 = vld [vmem:[%s2622_s4 + $0x18] sm:$0xff] (!%p304_p0)  ;;  %s1431_s23 = sadd.s32 (!%p304_p0), %s1872_s27, %s1572_s14  ;;  %s340_s12 = scalar_lea.vmem (!%p304_p0), [#allocation3], %s2048_s9 }
  0x27   : > { %v437_v15 = vld [vmem:[%s2621_s3] sm:$0xff] (!%p304_p0)  ;;  %v453_v18 = vld [vmem:[%s2622_s4 + $0x10] sm:$0xff] (!%p304_p0)  ;;  %v2071_v21 = vld [vmem:[%s312_s17 + $0x8] sm:$0xff] (!%p304_p0)  ;;  %s1434_s19 = sshll.u32 (!%p304_p0), %s340_s12, 4  ;;  %s2632_s21 = sand.u32 (!%p304_p0), 1, %s1864_s25   ;;  %s2554_s19 = int_to_ptr.vmem [resolvable:$true] %s1434_s19 }
  0x28   : > { %v445_v19 = vpack.c.bf16 (!%p304_p0), %v438_v16, %v437_v15  ;;  %v2069_v20 = vld [vmem:[%s312_s17] sm:$0xff] (!%p304_p0)  ;;  %v456_v22 = vld [vmem:[%s2622_s4 + $0x28] sm:$0xff] (!%p304_p0)  ;;  %v2082_v25 = vld [vmem:[%s312_s17 + $0x10] sm:$0xff] (!%p304_p0)  ;;  %s2566_s22 = scalar_lea.sflag (!%p304_p0), [#allocation4], %s2632_s21  ;;  %s1794_s10 = scalar_lea.vmem (!%p304_p0), %s2554_s19, 512 }
  0x29   : > { %420 = vperm.xlu1 (!%p304_p0), %1725, %v410_v7   ;;  %392 = vperm.xlu0 (!%p304_p0), %1724, %v382_v8   ;;  %v455_v23 = vld [vmem:[%s2622_s4 + $0x20] sm:$0xff] (!%p304_p0)  ;;  %v346_v24 = vadd.f32 (!%p304_p0), %v2071_v21, %v2069_v20  ;;  %v458_v26 = vld [vmem:[%s2622_s4 + $0x38] sm:$0xff] (!%p304_p0)  ;;  %v457_v27 = vld [vmem:[%s2622_s4 + $0x30] sm:$0xff] (!%p304_p0)  ;;  %p1795_p1 = scmp.ne.s32.totalorder (!%p304_p0), %s2554_s19, %s1794_s10  ;;  %s1892_s13 = smov (!%p304_p0), [#allocation3]  }
  0x2a   : > { %1604 = vmatprep.mubr.msk.bf16.mxu0 (!%p304_p0), %vm499_vm0, %v445_v19  ;;  %v2091_v29 = vld [vmem:[%s312_s17 + $0x18] sm:$0xff] (!%p304_p0)  ;;  %v796_v30 = vld [vmem:[%s2624_s6 + $0x8] sm:$0xff] (!%p304_p0)  ;;  %v795_v31 = vld [vmem:[%s2624_s6] sm:$0xff] (!%p304_p0)  ;;  %s1573_s17 = sshll.u32 (!%p304_p0), %s1431_s23, 7  ;;  %s1798_s18 = sshll.u32 (!%p304_p0), %s1892_s13, 4  ;;  %s1799_s18 = int_to_ptr.vmem [resolvable:$false] %s1798_s18 }
  0x2b   : > { %v347_v28 = vadd.f32 %v346_v24, %v2082_v25  ;;  %v798_v33 = vld [vmem:[%s2624_s6 + $0x18] sm:$0xff]  ;;  %v797_v34 = vld [vmem:[%s2624_s6 + $0x10] sm:$0xff]  ;;  %v1534_v36 = vld [vmem:[%s2619_s1 + $0x28] sm:$0xff]  ;;  %s2561_s9 = scalar_lea.hbm %s2625_s7, %s1573_s17  ;;  %p1796_p2 = pnand %p1795_p1, %p1996_p8 }
  0x2c   : > { %v1533_v37 = vld [vmem:[%s2619_s1 + $0x20] sm:$0xff]  ;;  %v1538_v39 = vld [vmem:[%s2620_s2 + $0x28] sm:$0xff]  ;;  %v1536_v42 = vld [vmem:[%s2619_s1 + $0x38] sm:$0xff]  ;;  %s1800_s14 = scalar_lea.vmem %s1799_s18, 1024  ;;  %p1801_p4 = scmp.lt.s32.totalorder %s2554_s19, %s1799_s18 }
  0x2d   : > { %402 = vperm.xlu1 %1725, %v384_v9   ;;  %397 = vperm.xlu0 %1724, %v383_v10   ;;  %v348_v32 = vadd.f32 %v347_v28, %v2091_v29  ;;  %v1537_v40 = vld [vmem:[%s2620_s2 + $0x20] sm:$0xff]  ;;  %v1535_v43 = vld [vmem:[%s2619_s1 + $0x30] sm:$0xff]  ;;  %v1540_v45 = vld [vmem:[%s2620_s2 + $0x38] sm:$0xff]  ;;  %p1797_p3 = pneg %p1796_p2  ;;  %p1802_p5 = scmp.lt.s32.totalorder %s1800_s14, %s1794_s10 }
  0x2e   : > { %v1539_v46 = vld [vmem:[%s2620_s2 + $0x30] sm:$0xff]  ;;  %v1550_v48 = vld [vmem:[%s2622_s4 + $0x48] sm:$0xff]  ;;  %v1549_v49 = vld [vmem:[%s2622_s4 + $0x40] sm:$0xff] }
  0x2f   : > { %v349_v35 = vrot.slane %v348_v32, 4  ;;  %v1552_v51 = vld [vmem:[%s2622_s4 + $0x58] sm:$0xff]  ;;  %v1551_v52 = vld [vmem:[%s2622_s4 + $0x50] sm:$0xff]  ;;  %v1554_v54 = vld [vmem:[%s2622_s4 + $0x68] sm:$0xff]  ;;  %p1803_p6 = por %p1802_p5, %p1801_p4 }
  0x30   : > { %v1553_v55 = vld [vmem:[%s2622_s4 + $0x60] sm:$0xff]  ;;  %v1556_v58 = vld [vmem:[%s2622_s4 + $0x78] sm:$0xff]  ;;  %v1555_v59 = vld [vmem:[%s2622_s4 + $0x70] sm:$0xff] }
  0x31   : > { %430 = vperm.xlu1 %1725, %v412_v11   ;;  %425 = vperm.xlu0 %1724, %v411_v12   ;;  %v350_v38 = vadd.f32 %v349_v35, %v348_v32  ;;  %v1566_v63 = vld [vmem:[%s2624_s6 + $0x28] sm:$0xff]  ;;  %v1565_v0 = vld [vmem:[%s2624_s6 + $0x20] sm:$0xff]  ;;  %v1568_v4 = vld [vmem:[%s2624_s6 + $0x38] sm:$0xff]  ;;  %p1804_p7 = pnand %p1803_p6, %p1797_p3 }
  0x32   : > { %v1567_v5 = vld [vmem:[%s2624_s6 + $0x30] sm:$0xff] }
  0x33   : > { %v351_v41 = vrot.slane %v350_v38, 2 }
  0x35   : > { %466 = vperm.xlu1 %1725, %v452_v13   ;;  %461 = vperm.xlu0 %1724, %v451_v14   ;;  %v352_v44 = vadd.f32 %v351_v41, %v350_v38 }
  0x37   : > { %v353_v47 = vrot.slane %v352_v44, 1 }
  0x39   : > { %476 = vperm.xlu1 %1725, %v454_v17   ;;  %471 = vperm.xlu0 %1724, %v453_v18   ;;  %v354_v50 = vadd.f32 %v353_v47, %v352_v44  ;;  %v440_v44 = vld [vmem:[%s2621_s3 + $0x18] sm:$0xff]  ;;  %v442_v47 = vld [vmem:[%s2621_s3 + $0x28] sm:$0xff] }
  0x3b   : > { %v356_v53 = vmul.f32 0.03125, %v354_v50  ;;  %v443_v50 = vld [vmem:[%s2621_s3 + $0x30] sm:$0xff] }
  0x3d   : > { %486 = vperm.xlu1 %1725, %v456_v22   ;;  %481 = vperm.xlu0 %1724, %v455_v23   ;;  %v357_v56 = vsub.f32 %v2069_v20, %v356_v53  ;;  %v358_v57 = vsub.f32 %v2071_v21, %v356_v53  ;;  %v359_v60 = vsub.f32 %v2082_v25, %v356_v53 }
  0x3e   : > { %v360_v1 = vsub.f32 %v2091_v29, %v356_v53  ;;  %v785_v53 = vld [vmem:[%s2623_s5] sm:$0xff] }
  0x3f   : > { %v361_v61 = vmul.f32 %v357_v56, %v357_v56  ;;  %v362_v62 = vmul.f32 %v358_v57, %v358_v57  ;;  %v363_v2 = vmul.f32 %v359_v60, %v359_v60 }
  0x40   : > { %v364_v6 = vmul.f32 %v360_v1, %v360_v1 }
  0x41   : > { %496 = vperm.xlu1 %1725, %v458_v26   ;;  %491 = vperm.xlu0 %1724, %v457_v27   ;;  %v365_v3 = vadd.f32 %v362_v62, %v361_v61 }
  0x43   : > { %v366_v7 = vadd.f32 %v365_v3, %v363_v2 }
  0x45   : > { %806 = vperm.xlu1 %1725, %v796_v30   ;;  %801 = vperm.xlu0 %1724, %v795_v31   ;;  %v367_v8 = vadd.f32 %v366_v7, %v364_v6 }
  0x47   : > { %v368_v9 = vrot.slane %v367_v8, 4 }
  0x49   : > { %816 = vperm.xlu1 %1725, %v798_v33   ;;  %811 = vperm.xlu0 %1724, %v797_v34   ;;  %v369_v10 = vadd.f32 %v368_v9, %v367_v8 }
  0x4b   : > { %v370_v11 = vrot.slane %v369_v10, 2 }
  0x4d   : > { %925 = vperm.xlu1 %1725, %v1534_v36   ;;  %920 = vperm.xlu0 %1724, %v1533_v37   ;;  %v371_v12 = vadd.f32 %v370_v11, %v369_v10 }
  0x4f   : > { %v372_v13 = vrot.slane %v371_v12, 1 }
  0x51   : > { %954 = vperm.xlu1 %1725, %v1538_v39   ;;  %949 = vperm.xlu0 %1724, %v1537_v40   ;;  %v373_v14 = vadd.f32 %v372_v13, %v371_v12 }
  0x53   : > { %v374_v15 = vmul.f32 0.03125, %v373_v14 }
  0x55   : > { %935 = vperm.xlu1 %1725, %v1536_v42   ;;  %930 = vperm.xlu0 %1724, %v1535_v43   ;;  %v375_v16 = vadd.f32 1e-05, %v374_v15  ;;  %v439_v43 = vld [vmem:[%s2621_s3 + $0x10] sm:$0xff] }
  0x57   : > { %1726 = vrsqrt.f32 %v375_v16 }
  0x59   : > { %964 = vperm.xlu1 %1725, %v1540_v45   ;;  %959 = vperm.xlu0 %1724, %v1539_v46   ;;  %v441_v46 = vld [vmem:[%s2621_s3 + $0x20] sm:$0xff] }
  0x5d   : > { %1002 = vperm.xlu1 %1725, %v1550_v48   ;;  %997 = vperm.xlu0 %1724, %v1549_v49   ;;  %v446_v48 = vpack.c.bf16 %v440_v44, %v439_v43  ;;  %v447_v49 = vpack.c.bf16 %v442_v47, %v441_v46  ;;  %v1891_v44 = vmov -1.0  }
  0x61   : > { %1012 = vperm.xlu1 %1725, %v1552_v51   ;;  %1007 = vperm.xlu0 %1724, %v1551_v52   ;;  %v1727_v17 = vpop.eup %1726  ;;  %v444_v51 = vld [vmem:[%s2621_s3 + $0x38] sm:$0xff] }
  0x62   : > { %v377_v18 = vmul.f32 %v1727_v17, %v357_v56  ;;  %v378_v23 = vmul.f32 %v1727_v17, %v358_v57  ;;  %v380_v32 = vmul.f32 %v1727_v17, %v360_v1  ;;  %v379_v33 = vmul.f32 %v1727_v17, %v359_v60 }
  0x63   : > { %v448_v52 = vpack.c.bf16 %v444_v51, %v443_v50 }
  0x65   : > { %1022 = vperm.xlu1 %1725, %v1554_v54   ;;  %1017 = vperm.xlu0 %1724, %v1553_v55   ;;  %v786_v54 = vld [vmem:[%s2623_s5 + $0x8] sm:$0xff] }
  0x66   : > { %v789_v55 = vpack.c.bf16 %v786_v54, %v785_v53 }
  0x68   : > { %1620 = vmatprep.mubr.msk.bf16.mxu1 %vm819_vm1, %v789_v55 }
  0x69   : > { %1032 = vperm.xlu1 %1725, %v1556_v58   ;;  %1027 = vperm.xlu0 %1724, %v1555_v59  }
  0x6d   : > { %1343 = vperm.xlu1 %1725, %v1566_v63   ;;  %1338 = vperm.xlu0 %1724, %v1565_v0  }
  0x71   : > { %1353 = vperm.xlu1 %1725, %v1568_v4   ;;  %1348 = vperm.xlu0 %1724, %v1567_v5  }
  0xa4   : > { %v416_v19 = vpop.permute.xlu1 %415  ;;  %v388_v22 = vpop.permute.xlu0 %387 }
  0xa5   : > { %v405_v24 = vmul.f32 %v388_v22, %v377_v18 }
  0xa7   : > { %v433_v30 = vadd.f32 %v416_v19, %v405_v24 }
  0xa8   : > { %v421_v26 = vpop.permute.xlu1 %420  ;;  %v393_v27 = vpop.permute.xlu0 %392 }
  0xa9   : > { %v406_v28 = vmul.f32 %v393_v27, %v378_v23 }
  0xab   : > { %v434_v31 = vadd.f32 %v421_v26, %v406_v28 }
  0xac   : > { %v403_v34 = vpop.permute.xlu1 %402  ;;  %v398_v35 = vpop.permute.xlu0 %397 }
  0xad   : > { %v449_v36 = vpack.c.bf16 %v434_v31, %v433_v30  ;;  %v408_v37 = vmul.f32 %v403_v34, %v380_v32  ;;  %v407_v38 = vmul.f32 %v398_v35, %v379_v33 }
  0xaf   : > { %1600 = vmatprep.subr.bf16.mxu0 %v449_v36 }
  0xb0   : > { %v431_v39 = vpop.permute.xlu1 %430  ;;  %v426_v40 = vpop.permute.xlu0 %425  ;;  %1601 = vmatpush3.bf16.msra.mxu0 %v449_v36 }
  0xb1   : > { %v436_v41 = vadd.f32 %v431_v39, %v408_v37  ;;  %v435_v42 = vadd.f32 %v426_v40, %v407_v38 }
  0xb3   : > { %v450_v45 = vpack.c.bf16 %v436_v41, %v435_v42 }
  0xb4   : > { %v462_v56 = vpop.permute.xlu0 %461  ;;  %v467_v57 = vpop.permute.xlu1 %466 }
  0xb5   : > { %1602 = vmatprep.subr.bf16.mxu0 %v450_v45 }
  0xb6   : > { %1603 = vmatpush3.bf16.msra.mxu0 %v450_v45 }
  0xb8   : > { %v472_v58 = vpop.permute.xlu0 %471  ;;  %v477_v62 = vpop.permute.xlu1 %476 }
  0xb9   : > { %1605 = vmatmul.mubr.msk.bf16.vlgmr.msra.gmra.mrb[0].mxu0 %vm499_vm0, %v446_v48 }
  0xba   : > { %1608 = vmatprep.mubr.msk.bf16.mxu0 %vm499_vm0, %v447_v49 }
  0xbc   : > { %v482_v9 = vpop.permute.xlu0 %481  ;;  %v487_v11 = vpop.permute.xlu1 %486 }
  0xc0   : > { %v492_v27 = vpop.permute.xlu0 %491  ;;  %v497_v30 = vpop.permute.xlu1 %496 }
  0xc1   : > { %1609 = vmatmul.mubr.msk.bf16.gmra.mrb[4].mxu0 %vm499_vm0, %v448_v52 }
 0x18c   : > { %v1606_v59 = vpop.f32.mrb[0].mxu0 }
 0x18d   : > { %v555_v60 = vadd.f32 %v1606_v59, %v472_v58  ;;  %v546_v61 = vpop.f32.mrb[1].mxu0 }
 0x18e   : > { %v547_v63 = vadd.f32 %v546_v61, %v462_v56  ;;  %v1607_v0 = vpop.f32.mrb[2].mxu0 }
 0x18f   : > { %v587_v1 = vmul.f32 0.70710677, %v555_v60  ;;  %v558_v2 = vadd.f32 %v1607_v0, %v477_v62  ;;  %v549_v3 = vpop.f32.mrb[3].mxu0  ;;  %v2210_v36 = vmul.f32 0.5, %v555_v60 }
 0x190   : > { %v585_v4 = vmul.f32 0.70710677, %v547_v63  ;;  %v550_v7 = vadd.f32 %v549_v3, %v467_v57  ;;  %v2218_v41 = vmul.f32 0.5, %v547_v63 }
 0x191   : > { %v611_v5 = vand.u32 2147483647, %v587_v1  ;;  %v2198_v6 = vmul.f32 0.70710677, %v558_v2  ;;  %vm595_vm2 = vcmp.ge.f32.partialorder %v587_v1, 0.0  ;;  %v2227_v46 = vmul.f32 0.5, %v558_v2 }
 0x192   : > { %v609_v8 = vand.u32 2147483647, %v585_v4  ;;  %v2201_v15 = vmul.f32 0.70710677, %v550_v7  ;;  %vm593_vm3 = vcmp.ge.f32.partialorder %v585_v4, 0.0  ;;  %v2225_v45 = vsel %vm595_vm2, 1.0, %v1891_v44 }
 0x193   : > { %v619_v10 = vmul.f32 0.3275911, %v611_v5  ;;  %v612_v13 = vand.u32 2147483647, %v2198_v6  ;;  %v715_v31 = vsub.f32 0.0, %v611_v5  ;;  %v2231_v49 = vsel %vm593_vm3, 1.0, %v1891_v44 }
 0x194   : > { %v617_v12 = vmul.f32 0.3275911, %v609_v8  ;;  %v1610_v16 = vpop.f32.mrb[4].mxu0  ;;  %v610_v22 = vand.u32 2147483647, %v2201_v15  ;;  %v713_v38 = vsub.f32 0.0, %v609_v8 }
 0x195   : > { %v627_v14 = vadd.f32 1.0, %v619_v10  ;;  %v620_v18 = vmul.f32 0.3275911, %v612_v13  ;;  %v562_v19 = vpop.f32.mrb[5].mxu0  ;;  %v2204_v32 = vadd.f32 %v1610_v16, %v492_v27  ;;  %v723_v40 = vmul.f32 %v715_v31, %v611_v5 }
 0x196   : > { %v625_v17 = vadd.f32 1.0, %v617_v12  ;;  %v1611_v23 = vpop.f32.mrb[6].mxu0  ;;  %v618_v28 = vmul.f32 0.3275911, %v610_v22  ;;  %v2206_v33 = vadd.f32 %v562_v19, %v482_v9  ;;  %v716_v47 = vsub.f32 0.0, %v612_v13 }
 0x197   : > { %1728 = vrcp.f32 %v627_v14  ;;  %v628_v24 = vadd.f32 1.0, %v620_v18  ;;  %v565_v26 = vpop.f32.mrb[7].mxu0  ;;  %v2208_v35 = vadd.f32 %v1611_v23, %v497_v30  ;;  %v2213_v37 = vmul.f32 0.70710677, %v2204_v32 }
 0x198   : > { %1730 = vrcp.f32 %v625_v17  ;;  %v626_v34 = vadd.f32 1.0, %v618_v28  ;;  %v2216_v39 = vmul.f32 0.70710677, %v2206_v33  ;;  %v2233_v50 = vmul.f32 0.5, %v550_v7 }
 0x199   : > { %1732 = vrcp.f32 %v628_v24  ;;  %v615_v42 = vand.u32 2147483647, %v2213_v37  ;;  %v2222_v43 = vmul.f32 0.70710677, %v2208_v35  ;;  %v2235_v52 = vadd.f32 %v565_v26, %v487_v11 }
 0x19a   : > { %1734 = vrcp.f32 %v626_v34  ;;  %v613_v48 = vand.u32 2147483647, %v2216_v39  ;;  %v721_v54 = vmul.f32 %v713_v38, %v609_v8  ;;  %vm596_vm4 = vcmp.ge.f32.partialorder %v2198_v6, 0.0 }
 0x19b   : > { %v623_v51 = vmul.f32 0.3275911, %v615_v42  ;;  %v2241_v56 = vand.u32 2147483647, %v2222_v43  ;;  %v733_v58 = vmul.f32 1.442695, %v723_v40  ;;  %v724_v61 = vmul.f32 %v716_v47, %v612_v13 }
 0x19c   : > { %v621_v55 = vmul.f32 0.3275911, %v613_v48  ;;  %v714_v59 = vsub.f32 0.0, %v610_v22  ;;  %v719_v62 = vsub.f32 0.0, %v615_v42  ;;  %v2248_v3 = vsel %vm596_vm4, 1.0, %v1891_v44 }
 0x19d   : > { %v631_v60 = vadd.f32 1.0, %v623_v51  ;;  %v624_v0 = vmul.f32 0.3275911, %v2241_v56  ;;  %v2251_v4 = vmul.f32 0.70710677, %v2235_v52  ;;  %vm594_vm5 = vcmp.ge.f32.partialorder %v2201_v15, 0.0 }
 0x19e   : > { %v629_v63 = vadd.f32 1.0, %v621_v55  ;;  %v717_v6 = vsub.f32 0.0, %v613_v48  ;;  %v729_v9 = vmul.f32 1.442695, %v721_v54  ;;  %v722_v11 = vmul.f32 %v714_v59, %v610_v22 }
 0x19f   : > { %1736 = vrcp.f32 %v631_v60  ;;  %v632_v7 = vadd.f32 1.0, %v624_v0  ;;  %v735_v13 = vmul.f32 1.442695, %v724_v61  ;;  %v727_v14 = vmul.f32 %v719_v62, %v615_v42 }
 0x1a0   : > { %1738 = vrcp.f32 %v629_v63  ;;  %v614_v16 = vand.u32 2147483647, %v2251_v4  ;;  %v2265_v23 = vsel %vm594_vm5, 1.0, %v1891_v44  ;;  %v725_v24 = vmul.f32 %v717_v6, %v613_v48 }
 0x1a1   : > { %v2237_v53 = vpop.eup %1728  ;;  %1740 = vpow2.f32 %v733_v58  ;;  %v731_v30 = vmul.f32 1.442695, %v722_v11  ;;  %v741_v34 = vmul.f32 1.442695, %v727_v14  ;;  %v720_v48 = vsub.f32 0.0, %v2241_v56 }
 0x1a2   : > { %v643_v57 = vmul.f32 1.0614054, %v2237_v53  ;;  %v2245_v1 = vpop.eup %1730  ;;  %1742 = vrcp.f32 %v632_v7  ;;  %v622_v26 = vmul.f32 0.3275911, %v614_v16  ;;  %v737_v51 = vmul.f32 1.442695, %v725_v24 }
 0x1a3   : > { %v2253_v5 = vpop.eup %1732  ;;  %v641_v19 = vmul.f32 1.0614054, %v2245_v1  ;;  %1744 = vpow2.f32 %v729_v9  ;;  %v718_v62 = vsub.f32 0.0, %v614_v16  ;;  %vm599_vm6 = vcmp.ge.f32.partialorder %v2213_v37, 0.0 }
 0x1a4   : > { %v651_v2 = vadd.f32 -1.4531521, %v643_v57  ;;  %v644_v10 = vmul.f32 1.0614054, %v2253_v5  ;;  %v2258_v12 = vpop.eup %1734  ;;  %v630_v38 = vadd.f32 1.0, %v622_v26  ;;  %1746 = vpow2.f32 %v735_v13 }
 0x1a5   : > { %v642_v22 = vmul.f32 1.0614054, %v2258_v12  ;;  %v649_v31 = vadd.f32 -1.4531521, %v641_v19  ;;  %vm600_vm7 = vcmp.ge.f32.partialorder %v2222_v43, 0.0  ;;  %vm597_vm8 = vcmp.ge.f32.partialorder %v2216_v39, 0.0 }
 0x1a6   : > { %v659_v8 = vmul.f32 %v2237_v53, %v651_v2  ;;  %v652_v18 = vadd.f32 -1.4531521, %v644_v10  ;;  %1748 = vrcp.f32 %v630_v38  ;;  %v728_v10 = vmul.f32 %v720_v48, %v2241_v56 }
 0x1a7   : > { %v650_v40 = vadd.f32 -1.4531521, %v642_v22  ;;  %v657_v15 = vmul.f32 %v2245_v1, %v649_v31  ;;  %1750 = vpow2.f32 %v731_v30  ;;  %v726_v22 = vmul.f32 %v718_v62, %v614_v16 }
 0x1a8   : > { %v667_v17 = vadd.f32 1.4214138, %v659_v8  ;;  %v660_v28 = vmul.f32 %v2253_v5, %v652_v18  ;;  %1752 = vpow2.f32 %v741_v34  ;;  %vm598_vm9 = vcmp.ge.f32.partialorder %v2251_v4, 0.0 }
 0x1a9   : > { %v658_v54 = vmul.f32 %v2258_v12, %v650_v40  ;;  %v2273_v55 = vpop.eup %1736  ;;  %v665_v59 = vadd.f32 1.4214138, %v657_v15  ;;  %1754 = vpow2.f32 %v737_v51  ;;  %v583_v39 = vmul.f32 0.5, %v2204_v32 }
 0x1aa   : > { %v675_v27 = vmul.f32 %v2237_v53, %v667_v17  ;;  %v668_v47 = vadd.f32 1.4214138, %v660_v28  ;;  %v2277_v60 = vpop.eup %1738  ;;  %v647_v61 = vmul.f32 1.0614054, %v2273_v55 }
 0x1ab   : > { %v666_v63 = vadd.f32 1.4214138, %v658_v54  ;;  %v645_v6 = vmul.f32 1.0614054, %v2277_v60  ;;  %v673_v7 = vmul.f32 %v2245_v1, %v665_v59  ;;  %v1741_v8 = vpop.eup %1740  ;;  %v739_v59 = vmul.f32 1.442695, %v726_v22 }
 0x1ac   : > { %v683_v42 = vadd.f32 -0.28449672, %v675_v27  ;;  %v676_v58 = vmul.f32 %v2253_v5, %v668_v47  ;;  %v655_v9 = vadd.f32 -1.4531521, %v647_v61  ;;  %v2284_v13 = vpop.eup %1742 }
 0x1ad   : > { %v674_v11 = vmul.f32 %v2258_v12, %v666_v63  ;;  %v653_v18 = vadd.f32 -1.4531521, %v645_v6  ;;  %v681_v19 = vadd.f32 -0.28449672, %v673_v7  ;;  %v648_v26 = vmul.f32 1.0614054, %v2284_v13  ;;  %v1745_v34 = vpop.eup %1744 }
 0x1ae   : > { %v691_v57 = vmul.f32 %v2237_v53, %v683_v42  ;;  %v684_v2 = vadd.f32 -0.28449672, %v676_v58  ;;  %v663_v24 = vmul.f32 %v2273_v55, %v655_v9  ;;  %v1747_v47 = vpop.eup %1746 }
 0x1af   : > { %v682_v27 = vadd.f32 -0.28449672, %v674_v11  ;;  %v661_v56 = vmul.f32 %v2277_v60, %v653_v18  ;;  %v689_v31 = vmul.f32 %v2245_v1, %v681_v19  ;;  %v656_v40 = vadd.f32 -1.4531521, %v648_v26 }
 0x1b0   : > { %v699_v0 = vadd.f32 0.2548296, %v691_v57  ;;  %v692_v17 = vmul.f32 %v2253_v5, %v684_v2  ;;  %v671_v38 = vadd.f32 1.4214138, %v663_v24  ;;  %v2294_v16 = vpop.eup %1748 }
 0x1b1   : > { %v690_v42 = vmul.f32 %v2258_v12, %v682_v27  ;;  %v669_v48 = vadd.f32 1.4214138, %v661_v56  ;;  %v697_v54 = vadd.f32 0.2548296, %v689_v31  ;;  %v664_v58 = vmul.f32 %v2284_v13, %v656_v40  ;;  %v1751_v62 = vpop.eup %1750 }
 0x1b2   : > { %v707_v14 = vmul.f32 %v2237_v53, %v699_v0  ;;  %v700_v30 = vadd.f32 0.2548296, %v692_v17  ;;  %v743_v53 = vmul.f32 1.442695, %v728_v10  ;;  %v679_v57 = vmul.f32 %v2273_v55, %v671_v38  ;;  %v1753_v7 = vpop.eup %1752 }
 0x1b3   : > { %v698_v61 = vadd.f32 0.2548296, %v690_v42  ;;  %v677_v2 = vmul.f32 %v2277_v60, %v669_v48  ;;  %v646_v6 = vmul.f32 1.0614054, %v2294_v16  ;;  %v705_v9 = vmul.f32 %v2245_v1, %v697_v54  ;;  %v1755_v18 = vpop.eup %1754 }
 0x1b4   : > { %v747_v28 = vmul.f32 %v1741_v8, %v707_v14  ;;  %v708_v51 = vmul.f32 %v2253_v5, %v700_v30  ;;  %v687_v5 = vadd.f32 -0.28449672, %v679_v57  ;;  %v672_v8 = vadd.f32 1.4214138, %v664_v58 }
 0x1b5   : > { %v706_v10 = vmul.f32 %v2258_v12, %v698_v61  ;;  %v685_v14 = vadd.f32 -0.28449672, %v677_v2  ;;  %1756 = vpow2.f32 %v743_v53  ;;  %v654_v17 = vadd.f32 -1.4531521, %v646_v6 }
 0x1b6   : > { %v755_v15 = vsub.f32 1.0, %v747_v28  ;;  %v748_v0 = vmul.f32 %v1747_v47, %v708_v51  ;;  %v680_v19 = vmul.f32 %v2284_v13, %v672_v8  ;;  %v745_v24 = vmul.f32 %v1745_v34, %v705_v9 }
 0x1b7   : > { %v746_v26 = vmul.f32 %v1751_v62, %v706_v10  ;;  %v693_v28 = vmul.f32 %v2277_v60, %v685_v14  ;;  %v662_v1 = vmul.f32 %v2294_v16, %v654_v17  ;;  %1758 = vpow2.f32 %v739_v59 }
 0x1b8   : > { %v763_v63 = vmul.f32 %v755_v15, %v2225_v45  ;;  %v756_v11 = vsub.f32 1.0, %v748_v0  ;;  %v695_v45 = vmul.f32 %v2273_v55, %v687_v5  ;;  %v688_v12 = vadd.f32 -0.28449672, %v680_v19 }
 0x1b9   : > { %v753_v56 = vsub.f32 1.0, %v745_v24  ;;  %v754_v31 = vsub.f32 1.0, %v746_v26  ;;  %v701_v40 = vadd.f32 0.2548296, %v693_v28  ;;  %v670_v53 = vadd.f32 1.4214138, %v662_v1 }
 0x1ba   : > { %v771_v22 = vadd.f32 1.0, %v763_v63  ;;  %v764_v27 = vmul.f32 %v756_v11, %v2248_v3  ;;  %v703_v30 = vadd.f32 0.2548296, %v695_v45  ;;  %v696_v34 = vmul.f32 %v2284_v13, %v688_v12 }
 0x1bb   : > { %v761_v47 = vmul.f32 %v753_v56, %v2231_v49  ;;  %v762_v3 = vmul.f32 %v754_v31, %v2265_v23  ;;  %v709_v48 = vmul.f32 %v2277_v60, %v701_v40  ;;  %v678_v54 = vmul.f32 %v2294_v16, %v670_v53  ;;  %v788_v31 = vld [vmem:[%s2623_s5 + $0x18] sm:$0xff]  ;;  %v802_v53 = vpop.permute.xlu0 %801 }
 0x1bc   : > { %v772_v38 = vadd.f32 1.0, %v764_v27  ;;  %v711_v42 = vmul.f32 %v2273_v55, %v703_v30  ;;  %v779_v15 = vmul.f32 %v771_v22, %v2210_v36  ;;  %v704_v58 = vadd.f32 0.2548296, %v696_v34 }
 0x1bd   : > { %v769_v61 = vadd.f32 1.0, %v761_v47  ;;  %v770_v59 = vadd.f32 1.0, %v762_v3  ;;  %v749_v62 = vmul.f32 %v1755_v18, %v709_v48  ;;  %v686_v55 = vadd.f32 -0.28449672, %v678_v54 }
 0x1be   : > { %v780_v51 = vmul.f32 %v772_v38, %v2227_v46  ;;  %v751_v57 = vmul.f32 %v1753_v7, %v711_v42  ;;  %v712_v49 = vmul.f32 %v2284_v13, %v704_v58  ;;  %v607_v46 = vsel %vm599_vm6, 1.0, %v1891_v44  ;;  %v807_v42 = vpop.permute.xlu1 %806 }
 0x1bf   : > { %v777_v23 = vmul.f32 %v769_v61, %v2218_v41  ;;  %v778_v36 = vmul.f32 %v770_v59, %v2233_v50  ;;  %v1757_v2 = vpop.eup %1756  ;;  %v694_v60 = vmul.f32 %v2294_v16, %v686_v55  ;;  %v757_v8 = vsub.f32 1.0, %v749_v62 }
 0x1c0   : > { %v792_v63 = vpack.c.bf16 %v780_v51, %v779_v15  ;;  %v759_v0 = vsub.f32 1.0, %v751_v57  ;;  %v752_v7 = vmul.f32 %v1757_v2, %v712_v49  ;;  %v608_v50 = vsel %vm600_vm7, 1.0, %v1891_v44  ;;  %v812_v51 = vpop.permute.xlu0 %811 }
 0x1c1   : > { %v791_v5 = vpack.c.bf16 %v778_v36, %v777_v23  ;;  %v702_v13 = vadd.f32 0.2548296, %v694_v60  ;;  %v1759_v41 = vpop.eup %1758  ;;  %v605_v11 = vsel %vm597_vm8, 1.0, %v1891_v44  ;;  %v584_v18 = vmul.f32 0.5, %v2208_v35  ;;  %v787_v35 = vld [vmem:[%s2623_s5 + $0x10] sm:$0xff] }
 0x1c2   : > { %v767_v6 = vmul.f32 %v759_v0, %v607_v46  ;;  %v760_v9 = vsub.f32 1.0, %v752_v7  ;;  %v765_v43 = vmul.f32 %v757_v8, %v605_v11  ;;  %v581_v1 = vmul.f32 0.5, %v2206_v33  ;;  %v1541_v33 = vld [vmem:[%s2621_s3 + $0x40] sm:$0xff]  ;;  %v817_v58 = vpop.permute.xlu1 %816 }
 0x1c3   : > { %1612 = vmatprep.subr.bf16.mxu1 %v791_v5  ;;  %v710_v10 = vmul.f32 %v2294_v16, %v702_v13  ;;  %v606_v16 = vsel %vm598_vm9, 1.0, %v1891_v44  ;;  %v582_v30 = vmul.f32 0.5, %v2235_v52  ;;  %v790_v38 = vpack.c.bf16 %v788_v31, %v787_v35  ;;  %v1542_v52 = vld [vmem:[%s2621_s3 + $0x48] sm:$0xff] }
 0x1c4   : > { %1613 = vmatpush3.bf16.msra.mxu1 %v791_v5  ;;  %v775_v37 = vadd.f32 1.0, %v767_v6  ;;  %v768_v14 = vmul.f32 %v760_v9, %v608_v50  ;;  %v773_v22 = vadd.f32 1.0, %v765_v43  ;;  %v980_v40 = vpack.c.bf16 %v1542_v52, %v1541_v33 }
 0x1c5   : > { %1614 = vmatprep.subr.bf16.mxu1 %v792_v63  ;;  %v750_v17 = vmul.f32 %v1759_v41, %v710_v10 }
 0x1c6   : > { %v776_v45 = vadd.f32 1.0, %v768_v14  ;;  %v783_v24 = vmul.f32 %v775_v37, %v583_v39  ;;  %v781_v12 = vmul.f32 %v773_v22, %v581_v1  ;;  %1628 = vmatprep.mubr.msk.bf16.mxu0 %vm499_vm0, %v980_v40 }
 0x1c7   : > { %v758_v19 = vsub.f32 1.0, %v750_v17 }
 0x1c8   : > { %1615 = vmatpush3.bf16.msra.mxu1 %v792_v63  ;;  %v784_v26 = vmul.f32 %v776_v45, %v584_v18  ;;  %v926_v45 = vpop.permute.xlu1 %925 }
 0x1c9   : > { %v766_v27 = vmul.f32 %v758_v19, %v606_v16  ;;  %v921_v19 = vpop.permute.xlu0 %920 }
 0x1ca   : > { %v794_v28 = vpack.c.bf16 %v784_v26, %v783_v24 }
 0x1cb   : > { %v774_v4 = vadd.f32 1.0, %v766_v27 }
 0x1cc   : > { %v955_v16 = vpop.permute.xlu1 %954 }
 0x1cd   : > { %v782_v56 = vmul.f32 %v774_v4, %v582_v30  ;;  %v950_v22 = vpop.permute.xlu0 %949 }
 0x1cf   : > { %v793_v32 = vpack.c.bf16 %v782_v56, %v781_v12 }
 0x1d0   : > { %v936_v27 = vpop.permute.xlu1 %935 }
 0x1d1   : > { %1616 = vmatprep.subr.bf16.mxu1 %v793_v32 }
 0x1d2   : > { %1617 = vmatpush3.bf16.msra.mxu1 %v793_v32 }
 0x1d3   : > { %1618 = vmatprep.subr.bf16.mxu1 %v794_v28 }
 0x1d4   : > { %v965_v33 = vpop.permute.xlu1 %964 }
 0x1d6   : > { %1619 = vmatpush3.bf16.msra.mxu1 %v794_v28  ;;  %v931_v28 = vpop.permute.xlu0 %930 }
 0x1d9   : > { %1621 = vmatmul.mubr.msk.bf16.vlgmr.msra.gmra.mrb[0].mxu1 %vm819_vm1, %v790_v38 }
 0x1da   : > { %v960_v52 = vpop.permute.xlu0 %959 }
 0x2ac   : > { %v1622_v34 = vpop.f32.mrb[0].mxu1 }
 0x2ad   : > { %v860_v47 = vpop.f32.mrb[1].mxu1  ;;  %v869_v54 = vadd.f32 %v1622_v34, %v812_v51  ;;  %v1544_v51 = vld [vmem:[%s2621_s3 + $0x58] sm:$0xff] }
 0x2ae   : > { %v861_v3 = vadd.f32 %v860_v47, %v802_v53  ;;  %v1623_v15 = vpop.f32.mrb[2].mxu1 }
 0x2af   : > { %v863_v48 = vpop.f32.mrb[3].mxu1  ;;  %v872_v59 = vadd.f32 %v1623_v15, %v817_v58  ;;  %v2356_v55 = vadd.f32 %v869_v54, %v2082_v25  ;;  %v1543_v15 = vld [vmem:[%s2621_s3 + $0x50] sm:$0xff]  ;;  %v1546_v54 = vld [vmem:[%s2621_s3 + $0x68] sm:$0xff] }
 0x2b0   : > { %v864_v57 = vadd.f32 %v863_v48, %v807_v42  ;;  %v2350_v61 = vadd.f32 %v861_v3, %v2069_v20  ;;  %v1545_v48 = vld [vmem:[%s2621_s3 + $0x60] sm:$0xff] }
 0x2b1   : > { %v2361_v0 = vadd.f32 %v872_v59, %v2091_v29  ;;  %v982_v58 = vpack.c.bf16 %v1546_v54, %v1545_v48  ;;  %v1547_v59 = vld [vmem:[%s2621_s3 + $0x70] sm:$0xff] }
 0x2b2   : > { %v2353_v62 = vadd.f32 %v864_v57, %v2071_v21  ;;  %v981_v57 = vpack.c.bf16 %v1544_v51, %v1543_v15 }
 0x2b4   : > { %v879_v63 = vadd.f32 %v2353_v62, %v2350_v61 }
 0x2b6   : > { %v880_v49 = vadd.f32 %v879_v63, %v2356_v55  ;;  %v1548_v63 = vld [vmem:[%s2621_s3 + $0x78] sm:$0xff] }
 0x2b8   : > { %v881_v23 = vadd.f32 %v880_v49, %v2361_v0  ;;  %v983_v49 = vpack.c.bf16 %v1548_v63, %v1547_v59 }
 0x2ba   : > { %v882_v36 = vrot.slane %v881_v23, 4 }
 0x2bc   : > { %v883_v20 = vadd.f32 %v882_v36, %v881_v23  ;;  %v1561_v23 = vld [vmem:[%s2623_s5 + $0x20] sm:$0xff]  ;;  %v1562_v36 = vld [vmem:[%s2623_s5 + $0x28] sm:$0xff] }
 0x2be   : > { %v884_v2 = vrot.slane %v883_v20, 2 }
 0x2c0   : > { %v885_v46 = vadd.f32 %v884_v2, %v883_v20  ;;  %v1325_v20 = vpack.c.bf16 %v1562_v36, %v1561_v23  ;;  %v998_v2 = vpop.permute.xlu0 %997 }
 0x2c2   : > { %v886_v60 = vrot.slane %v885_v46, 1  ;;  %1644 = vmatprep.mubr.msk.bf16.mxu1 %vm819_vm1, %v1325_v20 }
 0x2c4   : > { %v887_v21 = vadd.f32 %v886_v60, %v885_v46  ;;  %v1003_v46 = vpop.permute.xlu1 %1002  ;;  %v1008_v60 = vpop.permute.xlu0 %1007 }
 0x2c6   : > { %v888_v6 = vmul.f32 0.03125, %v887_v21 }
 0x2c8   : > { %v889_v25 = vsub.f32 %v2350_v61, %v888_v6  ;;  %v890_v7 = vsub.f32 %v2353_v62, %v888_v6  ;;  %v891_v5 = vsub.f32 %v2356_v55, %v888_v6  ;;  %v892_v29 = vsub.f32 %v2361_v0, %v888_v6 }
 0x2ca   : > { %v893_v8 = vmul.f32 %v889_v25, %v889_v25  ;;  %v894_v13 = vmul.f32 %v890_v7, %v890_v7  ;;  %v895_v9 = vmul.f32 %v891_v5, %v891_v5  ;;  %v896_v50 = vmul.f32 %v892_v29, %v892_v29 }
 0x2cc   : > { %v897_v41 = vadd.f32 %v894_v13, %v893_v8 }
 0x2ce   : > { %v898_v10 = vadd.f32 %v897_v41, %v895_v9 }
 0x2d0   : > { %v899_v37 = vadd.f32 %v898_v10, %v896_v50 }
 0x2d2   : > { %v900_v11 = vrot.slane %v899_v37, 4 }
 0x2d4   : > { %v901_v14 = vadd.f32 %v900_v11, %v899_v37 }
 0x2d6   : > { %v902_v43 = vrot.slane %v901_v14, 2 }
 0x2d8   : > { %v903_v17 = vadd.f32 %v902_v43, %v901_v14  ;;  %v1018_v14 = vpop.permute.xlu0 %1017 }
 0x2da   : > { %v904_v39 = vrot.slane %v903_v17, 1 }
 0x2dc   : > { %v905_v18 = vadd.f32 %v904_v39, %v903_v17 }
 0x2de   : > { %v906_v24 = vmul.f32 0.03125, %v905_v18 }
 0x2e0   : > { %v907_v26 = vadd.f32 1e-05, %v906_v24 }
 0x2e2   : > { %1760 = vrsqrt.f32 %v907_v26 }
 0x2ec   : > { %v1761_v1 = vpop.eup %1760 }
 0x2ed   : > { %v910_v30 = vmul.f32 %v1761_v1, %v890_v7  ;;  %v909_v4 = vmul.f32 %v1761_v1, %v889_v25  ;;  %v911_v12 = vmul.f32 %v1761_v1, %v891_v5  ;;  %v912_v56 = vmul.f32 %v1761_v1, %v892_v29  ;;  %v1013_v7 = vpop.permute.xlu1 %1012 }
 0x2ef   : > { %v938_v32 = vmul.f32 %v921_v19, %v909_v4  ;;  %v939_v35 = vmul.f32 %v926_v45, %v910_v30  ;;  %v940_v31 = vmul.f32 %v931_v28, %v911_v12  ;;  %v941_v38 = vmul.f32 %v936_v27, %v912_v56  ;;  %v1028_v4 = vpop.permute.xlu0 %1027 }
 0x2f1   : > { %v967_v40 = vadd.f32 %v950_v22, %v938_v32  ;;  %v968_v53 = vadd.f32 %v955_v16, %v939_v35  ;;  %v969_v42 = vadd.f32 %v960_v52, %v940_v31  ;;  %v970_v34 = vadd.f32 %v965_v33, %v941_v38  ;;  %v1023_v17 = vpop.permute.xlu1 %1022 }
 0x2f3   : > { %v984_v47 = vpack.c.bf16 %v968_v53, %v967_v40  ;;  %v985_v3 = vpack.c.bf16 %v970_v34, %v969_v42 }
 0x2f5   : > { %1624 = vmatprep.subr.bf16.mxu0 %v984_v47  ;;  %v1033_v56 = vpop.permute.xlu1 %1032 }
 0x2f6   : > { %1625 = vmatpush3.bf16.msra.mxu0 %v984_v47 }
 0x2f7   : > { %1626 = vmatprep.subr.bf16.mxu0 %v985_v3 }
 0x2fa   : > { %1627 = vmatpush3.bf16.msra.mxu0 %v985_v3 }
 0x2fd   : > { %1629 = vmatmul.mubr.msk.bf16.vlgmr.msra.gmra.mrb[8].mxu0 %vm499_vm0, %v981_v57 }
 0x2fe   : > { %1632 = vmatprep.mubr.msk.bf16.mxu0 %vm499_vm0, %v982_v58 }
 0x305   : > { %1633 = vmatmul.mubr.msk.bf16.gmra.mrb[12].mxu0 %vm499_vm0, %v983_v49 }
 0x3d0   : > { %v1630_v21 = vpop.f32.mrb[8].mxu0 }
 0x3d1   : > { %v1090_v6 = vadd.f32 %v1630_v21, %v1008_v60  ;;  %v1081_v25 = vpop.f32.mrb[9].mxu0 }
 0x3d2   : > { %v1082_v5 = vadd.f32 %v1081_v25, %v998_v2  ;;  %v1631_v29 = vpop.f32.mrb[10].mxu0 }
 0x3d3   : > { %v1122_v8 = vmul.f32 0.70710677, %v1090_v6  ;;  %v1093_v13 = vadd.f32 %v1631_v29, %v1013_v7  ;;  %v1084_v9 = vpop.f32.mrb[11].mxu0  ;;  %v2425_v15 = vmul.f32 0.5, %v1090_v6 }
 0x3d4   : > { %v2397_v41 = vmul.f32 0.70710677, %v1082_v5  ;;  %v2401_v37 = vadd.f32 %v1084_v9, %v1003_v46  ;;  %v2427_v51 = vmul.f32 0.5, %v1082_v5 }
 0x3d5   : > { %v1146_v50 = vand.u32 2147483647, %v1122_v8  ;;  %v2399_v10 = vmul.f32 0.70710677, %v1093_v13  ;;  %vm1130_vm10 = vcmp.ge.f32.partialorder %v1122_v8, 0.0  ;;  %v2433_v58 = vmul.f32 0.5, %v1093_v13 }
 0x3d6   : > { %v1144_v11 = vand.u32 2147483647, %v2397_v41  ;;  %v2406_v19 = vmul.f32 0.70710677, %v2401_v37  ;;  %v2431_v54 = vsel %vm1130_vm10, 1.0, %v1891_v44  ;;  %vm1128_vm11 = vcmp.ge.f32.partialorder %v2397_v41, 0.0 }
 0x3d7   : > { %v1154_v43 = vmul.f32 0.3275911, %v1146_v50  ;;  %v1147_v18 = vand.u32 2147483647, %v2399_v10  ;;  %v1250_v32 = vsub.f32 0.0, %v1146_v50  ;;  %vm1131_vm12 = vcmp.ge.f32.partialorder %v2399_v10, 0.0 }
 0x3d8   : > { %v1152_v39 = vmul.f32 0.3275911, %v1144_v11  ;;  %v1634_v24 = vpop.f32.mrb[12].mxu0  ;;  %v1145_v27 = vand.u32 2147483647, %v2406_v19  ;;  %v1248_v52 = vsub.f32 0.0, %v1144_v11 }
 0x3d9   : > { %v1162_v45 = vadd.f32 1.0, %v1154_v43  ;;  %v1155_v16 = vmul.f32 0.3275911, %v1147_v18  ;;  %v1097_v22 = vpop.f32.mrb[13].mxu0  ;;  %v2409_v35 = vadd.f32 %v1634_v24, %v1028_v4  ;;  %v1258_v42 = vmul.f32 %v1250_v32, %v1146_v50 }
 0x3da   : > { %v1160_v26 = vadd.f32 1.0, %v1152_v39  ;;  %v1635_v28 = vpop.f32.mrb[14].mxu0  ;;  %v1153_v12 = vmul.f32 0.3275911, %v1145_v27  ;;  %v2411_v31 = vadd.f32 %v1097_v22, %v1018_v14  ;;  %v1251_v34 = vsub.f32 0.0, %v1147_v18 }
 0x3db   : > { %1762 = vrcp.f32 %v1162_v45  ;;  %v1163_v1 = vadd.f32 1.0, %v1155_v16  ;;  %v1100_v30 = vpop.f32.mrb[15].mxu0  ;;  %v2413_v33 = vadd.f32 %v1635_v28, %v1033_v56  ;;  %v2416_v40 = vmul.f32 0.70710677, %v2409_v35 }
 0x3dc   : > { %1764 = vrcp.f32 %v1160_v26  ;;  %v1161_v38 = vadd.f32 1.0, %v1153_v12  ;;  %v2419_v53 = vmul.f32 0.70710677, %v2411_v31  ;;  %v1256_v57 = vmul.f32 %v1248_v52, %v1144_v11 }
 0x3dd   : > { %1766 = vrcp.f32 %v1163_v1  ;;  %v1150_v47 = vand.u32 2147483647, %v2416_v40  ;;  %v2423_v3 = vmul.f32 0.70710677, %v2413_v33  ;;  %v1249_v49 = vsub.f32 0.0, %v1145_v27 }
 0x3de   : > { %1768 = vrcp.f32 %v1161_v38  ;;  %v1148_v48 = vand.u32 2147483647, %v2419_v53  ;;  %v1268_v46 = vmul.f32 1.442695, %v1258_v42  ;;  %v1259_v60 = vmul.f32 %v1251_v34, %v1147_v18 }
 0x3df   : > { %v1158_v59 = vmul.f32 0.3275911, %v1150_v47  ;;  %v2439_v36 = vand.u32 2147483647, %v2423_v3  ;;  %v2446_v5 = vadd.f32 %v1100_v30, %v1023_v17  ;;  %v1264_v8 = vmul.f32 1.442695, %v1256_v57 }
 0x3e0   : > { %v1156_v23 = vmul.f32 0.3275911, %v1148_v48  ;;  %v1257_v50 = vmul.f32 %v1249_v49, %v1145_v27  ;;  %v1254_v39 = vsub.f32 0.0, %v1150_v47  ;;  %v1270_v45 = vmul.f32 1.442695, %v1259_v60 }
 0x3e1   : > { %v1166_v21 = vadd.f32 1.0, %v1158_v59  ;;  %v1159_v7 = vmul.f32 0.3275911, %v2439_v36  ;;  %v1252_v24 = vsub.f32 0.0, %v1148_v48  ;;  %v2457_v26 = vmul.f32 0.70710677, %v2446_v5 }
 0x3e2   : > { %v1164_v25 = vadd.f32 1.0, %v1156_v23  ;;  %v2463_v28 = vsel %vm1128_vm11, 1.0, %v1891_v44  ;;  %v1266_v30 = vmul.f32 1.442695, %v1257_v50  ;;  %v1262_v32 = vmul.f32 %v1254_v39, %v1150_v47 }
 0x3e3   : > { %1770 = vrcp.f32 %v1166_v21  ;;  %v1167_v11 = vadd.f32 1.0, %v1159_v7  ;;  %v2471_v52 = vsel %vm1131_vm12, 1.0, %v1891_v44  ;;  %v1260_v42 = vmul.f32 %v1252_v24, %v1148_v48 }
 0x3e4   : > { %1772 = vrcp.f32 %v1164_v25  ;;  %v2474_v41 = vand.u32 2147483647, %v2457_v26  ;;  %v1255_v47 = vsub.f32 0.0, %v2439_v36  ;;  %vm1129_vm13 = vcmp.ge.f32.partialorder %v2406_v19, 0.0 }
 0x3e5   : > { %v2435_v63 = vpop.eup %1762  ;;  %1774 = vpow2.f32 %v1268_v46  ;;  %v1276_v60 = vmul.f32 1.442695, %v1262_v32  ;;  %v1272_v7 = vmul.f32 1.442695, %v1260_v42  ;;  %vm1134_vm14 = vcmp.ge.f32.partialorder %v2416_v40, 0.0 }
 0x3e6   : > { %v2441_v20 = vpop.eup %1764  ;;  %v1178_v2 = vmul.f32 1.0614054, %v2435_v63  ;;  %1776 = vrcp.f32 %v1167_v11  ;;  %v1157_v23 = vmul.f32 0.3275911, %v2474_v41  ;;  %vm1135_vm15 = vcmp.ge.f32.partialorder %v2423_v3, 0.0 }
 0x3e7   : > { %v1176_v6 = vmul.f32 1.0614054, %v2441_v20  ;;  %v2449_v13 = vpop.eup %1766  ;;  %1778 = vpow2.f32 %v1264_v8  ;;  %vm1132_vm0 = vcmp.ge.f32.partialorder %v2419_v53, 0.0  ;;  %vm1133_vm2 = vcmp.ge.f32.partialorder %v2457_v26, 0.0  ;;  %v1563_v26 = vld [vmem:[%s2623_s5 + $0x30] sm:$0xff] }
 0x3e8   : > { %v1186_v29 = vadd.f32 -1.4531521, %v1178_v2  ;;  %v1179_v43 = vmul.f32 1.0614054, %v2449_v13  ;;  %v2453_v18 = vpop.eup %1768  ;;  %1780 = vpow2.f32 %v1270_v45 }
 0x3e9   : > { %v1184_v9 = vadd.f32 -1.4531521, %v1176_v6  ;;  %v1177_v27 = vmul.f32 1.0614054, %v2453_v18  ;;  %1782 = vpow2.f32 %v1266_v30 }
 0x3ea   : > { %v1194_v14 = vmul.f32 %v2435_v63, %v1186_v29  ;;  %v1187_v22 = vadd.f32 -1.4531521, %v1179_v43  ;;  %v1165_v29 = vadd.f32 1.0, %v1157_v23 }
 0x3eb   : > { %v1192_v17 = vmul.f32 %v2441_v20, %v1184_v9  ;;  %v1185_v56 = vadd.f32 -1.4531521, %v1177_v27 }
 0x3ec   : > { %v1202_v16 = vadd.f32 1.4214138, %v1194_v14  ;;  %v1195_v12 = vmul.f32 %v2449_v13, %v1187_v22  ;;  %1784 = vrcp.f32 %v1165_v29 }
 0x3ed   : > { %v1200_v1 = vadd.f32 1.4214138, %v1192_v17  ;;  %v1193_v59 = vmul.f32 %v2453_v18, %v1185_v56  ;;  %v2479_v2 = vpop.eup %1770  ;;  %v1263_v17 = vmul.f32 %v1255_v47, %v2439_v36  ;;  %1786 = vpow2.f32 %v1276_v60 }
 0x3ee   : > { %v1210_v4 = vmul.f32 %v2435_v63, %v1202_v16  ;;  %v1203_v57 = vadd.f32 1.4214138, %v1195_v12  ;;  %v2484_v21 = vpop.eup %1772  ;;  %v1182_v25 = vmul.f32 1.0614054, %v2479_v2 }
 0x3ef   : > { %v1208_v38 = vmul.f32 %v2441_v20, %v1200_v1  ;;  %v1201_v46 = vadd.f32 1.4214138, %v1193_v59  ;;  %v1775_v8 = vpop.eup %1774  ;;  %v1180_v14 = vmul.f32 1.0614054, %v2484_v21 }
 0x3f0   : > { %v1218_v34 = vadd.f32 -0.28449672, %v1210_v4  ;;  %v1211_v48 = vmul.f32 %v2449_v13, %v1203_v57  ;;  %v1190_v39 = vadd.f32 -1.4531521, %v1182_v25  ;;  %v2491_v45 = vpop.eup %1776  ;;  %v1278_v57 = vmul.f32 1.442695, %v1263_v17 }
 0x3f1   : > { %v1216_v49 = vadd.f32 -0.28449672, %v1208_v38  ;;  %v1209_v11 = vmul.f32 %v2453_v18, %v1201_v46  ;;  %v1188_v27 = vadd.f32 -1.4531521, %v1180_v14  ;;  %v1779_v1 = vpop.eup %1778  ;;  %v1183_v12 = vmul.f32 1.0614054, %v2491_v45 }
 0x3f2   : > { %v1226_v10 = vmul.f32 %v2435_v63, %v1218_v34  ;;  %v1219_v50 = vadd.f32 -0.28449672, %v1211_v48  ;;  %v1198_v4 = vmul.f32 %v2479_v2, %v1190_v39  ;;  %v1781_v59 = vpop.eup %1780  ;;  %1788 = vpow2.f32 %v1278_v57 }
 0x3f3   : > { %v1224_v6 = vmul.f32 %v2441_v20, %v1216_v49  ;;  %v1217_v22 = vadd.f32 -0.28449672, %v1209_v11  ;;  %v1196_v38 = vmul.f32 %v2484_v21, %v1188_v27  ;;  %v1191_v34 = vadd.f32 -1.4531521, %v1183_v12 }
 0x3f4   : > { %v1234_v9 = vadd.f32 0.2548296, %v1226_v10  ;;  %v1227_v16 = vmul.f32 %v2449_v13, %v1219_v50  ;;  %v1783_v10 = vpop.eup %1782  ;;  %1790 = vpow2.f32 %v1272_v7 }
 0x3f5   : > { %v1232_v43 = vadd.f32 0.2548296, %v1224_v6  ;;  %v1225_v36 = vmul.f32 %v2453_v18, %v1217_v22  ;;  %v1204_v23 = vadd.f32 1.4214138, %v1196_v38  ;;  %v1199_v60 = vmul.f32 %v2491_v45, %v1191_v34 }
 0x3f6   : > { %v1242_v24 = vmul.f32 %v2435_v63, %v1234_v9  ;;  %v1235_v32 = vadd.f32 0.2548296, %v1227_v16  ;;  %v1206_v63 = vadd.f32 1.4214138, %v1198_v4  ;;  %v1253_v6 = vsub.f32 0.0, %v2474_v41 }
 0x3f7   : > { %v1240_v30 = vmul.f32 %v2441_v20, %v1232_v43  ;;  %v1233_v20 = vadd.f32 0.2548296, %v1225_v36  ;;  %v1212_v9 = vmul.f32 %v2484_v21, %v1204_v23  ;;  %v1207_v11 = vadd.f32 1.4214138, %v1199_v60 }
 0x3f8   : > { %v1282_v56 = vmul.f32 %v1775_v8, %v1242_v24  ;;  %v1243_v47 = vmul.f32 %v2449_v13, %v1235_v32  ;;  %v1214_v46 = vmul.f32 %v2479_v2, %v1206_v63  ;;  %v1137_v13 = vsel %vm1129_vm13, 1.0, %v1891_v44  ;;  %v2511_v24 = vpop.eup %1784 }
 0x3f9   : > { %v1280_v42 = vmul.f32 %v1779_v1, %v1240_v30  ;;  %v1241_v8 = vmul.f32 %v2453_v18, %v1233_v20  ;;  %v1220_v17 = vadd.f32 -0.28449672, %v1212_v9  ;;  %v1215_v18 = vmul.f32 %v2491_v45, %v1207_v11  ;;  %v1787_v30 = vpop.eup %1786 }
 0x3fa   : > { %v1290_v49 = vsub.f32 1.0, %v1282_v56  ;;  %v1283_v29 = vmul.f32 %v1781_v59, %v1243_v47  ;;  %v1222_v50 = vadd.f32 -0.28449672, %v1214_v46  ;;  %v1261_v16 = vmul.f32 %v1253_v6, %v2474_v41 }
 0x3fb   : > { %v1288_v48 = vsub.f32 1.0, %v1280_v42  ;;  %v1281_v39 = vmul.f32 %v1783_v10, %v1241_v8  ;;  %v1228_v1 = vmul.f32 %v2484_v21, %v1220_v17  ;;  %v1223_v4 = vadd.f32 -0.28449672, %v1215_v18 }
 0x3fc   : > { %v1298_v25 = vmul.f32 %v1290_v49, %v2431_v54  ;;  %v1291_v43 = vsub.f32 1.0, %v1283_v29  ;;  %v1230_v54 = vmul.f32 %v2479_v2, %v1222_v50  ;;  %v1181_v12 = vmul.f32 1.0614054, %v2511_v24  ;;  %v1789_v10 = vpop.eup %1788 }
 0x3fd   : > { %v1296_v14 = vmul.f32 %v1288_v48, %v2463_v28  ;;  %v1289_v27 = vsub.f32 1.0, %v1281_v39  ;;  %v1113_v36 = vmul.f32 0.5, %v2401_v37  ;;  %v1236_v42 = vadd.f32 0.2548296, %v1228_v1 }
 0x3fe   : > { %v1306_v22 = vadd.f32 1.0, %v1298_v25  ;;  %v1299_v19 = vmul.f32 %v1291_v43, %v2471_v52  ;;  %v1238_v28 = vadd.f32 0.2548296, %v1230_v54  ;;  %v1231_v41 = vmul.f32 %v2491_v45, %v1223_v4  ;;  %v1791_v40 = vpop.eup %1790 }
 0x3ff   : > { %v1304_v56 = vadd.f32 1.0, %v1296_v14  ;;  %v1297_v7 = vmul.f32 %v1289_v27, %v1137_v13  ;;  %v1189_v63 = vadd.f32 -1.4531521, %v1181_v12  ;;  %v1274_v59 = vmul.f32 1.442695, %v1261_v16 }
 0x400   : > { %v1307_v32 = vadd.f32 1.0, %v1299_v19  ;;  %v1246_v38 = vmul.f32 %v2479_v2, %v1238_v28  ;;  %v1314_v52 = vmul.f32 %v1306_v22, %v2425_v15  ;;  %v1239_v47 = vadd.f32 0.2548296, %v1231_v41 }
 0x401   : > { %v1305_v57 = vadd.f32 1.0, %v1297_v7  ;;  %v1197_v20 = vmul.f32 %v2511_v24, %v1189_v63  ;;  %v1312_v37 = vmul.f32 %v1304_v56, %v2427_v51  ;;  %v1244_v46 = vmul.f32 %v2484_v21, %v1236_v42  ;;  %v1344_v7 = vpop.permute.xlu1 %1343 }
 0x402   : > { %v1315_v34 = vmul.f32 %v1307_v32, %v2433_v58  ;;  %v1286_v49 = vmul.f32 %v1787_v30, %v1246_v38  ;;  %v1247_v15 = vmul.f32 %v2491_v45, %v1239_v47  ;;  %v1142_v58 = vsel %vm1134_vm14, 1.0, %v1891_v44 }
 0x403   : > { %v1313_v23 = vmul.f32 %v1305_v57, %v1113_v36  ;;  %v1205_v60 = vadd.f32 1.4214138, %v1197_v20  ;;  %1792 = vpow2.f32 %v1274_v59  ;;  %v1284_v8 = vmul.f32 %v1791_v40, %v1244_v46 }
 0x404   : > { %v1328_v2 = vpack.c.bf16 %v1315_v34, %v1314_v52  ;;  %v1294_v48 = vsub.f32 1.0, %v1286_v49  ;;  %v1287_v29 = vmul.f32 %v1789_v10, %v1247_v15  ;;  %v1143_v21 = vsel %vm1135_vm15, 1.0, %v1891_v44 }
 0x405   : > { %v1327_v6 = vpack.c.bf16 %v1313_v23, %v1312_v37  ;;  %v1213_v51 = vmul.f32 %v2511_v24, %v1205_v60  ;;  %v1118_v14 = vmul.f32 0.5, %v2409_v35  ;;  %v1119_v43 = vmul.f32 0.5, %v2413_v33  ;;  %v1354_v52 = vpop.permute.xlu1 %1353 }
 0x406   : > { %v1302_v25 = vmul.f32 %v1294_v48, %v1142_v58  ;;  %v1295_v9 = vsub.f32 1.0, %v1287_v29  ;;  %v1292_v3 = vsub.f32 1.0, %v1284_v8  ;;  %v1140_v19 = vsel %vm1132_vm0, 1.0, %v1891_v44 }
 0x407   : > { %1636 = vmatprep.subr.bf16.mxu1 %v1327_v6  ;;  %v1221_v13 = vadd.f32 -0.28449672, %v1213_v51  ;;  %v1141_v33 = vsel %vm1133_vm2, 1.0, %v1891_v44  ;;  %v1116_v4 = vmul.f32 0.5, %v2411_v31  ;;  %v1117_v12 = vmul.f32 0.5, %v2446_v5  ;;  %v1564_v44 = vld [vmem:[%s2623_s5 + $0x38] sm:$0xff]  ;;  %v1339_v5 = vpop.permute.xlu0 %1338 }
 0x408   : > { %1637 = vmatpush3.bf16.msra.mxu1 %v1327_v6  ;;  %v1310_v45 = vadd.f32 1.0, %v1302_v25  ;;  %v1303_v50 = vmul.f32 %v1295_v9, %v1143_v21  ;;  %v1300_v27 = vmul.f32 %v1292_v3, %v1140_v19  ;;  %v1326_v31 = vpack.c.bf16 %v1564_v44, %v1563_v26 }
 0x409   : > { %1638 = vmatprep.subr.bf16.mxu1 %v1328_v2  ;;  %v1229_v11 = vmul.f32 %v2511_v24, %v1221_v13 }
 0x40a   : > { %v1311_v39 = vadd.f32 1.0, %v1303_v50  ;;  %v1318_v54 = vmul.f32 %v1310_v45, %v1118_v14  ;;  %v1308_v53 = vadd.f32 1.0, %v1300_v27 }
 0x40b   : > { %v1237_v17 = vadd.f32 0.2548296, %v1229_v11  ;;  %v1349_v38 = vpop.permute.xlu0 %1348 }
 0x40c   : > { %1639 = vmatpush3.bf16.msra.mxu1 %v1328_v2  ;;  %v1319_v18 = vmul.f32 %v1311_v39, %v1119_v43  ;;  %v1316_v56 = vmul.f32 %v1308_v53, %v1116_v4 }
 0x40d   : > { %v1245_v16 = vmul.f32 %v2511_v24, %v1237_v17  ;;  %v1793_v22 = vpop.eup %1792 }
 0x40e   : > { %v1330_v35 = vpack.c.bf16 %v1319_v18, %v1318_v54 }
 0x40f   : > { %v1285_v1 = vmul.f32 %v1793_v22, %v1245_v16 }
 0x411   : > { %v1293_v30 = vsub.f32 1.0, %v1285_v1 }
 0x413   : > { %v1301_v28 = vmul.f32 %v1293_v30, %v1141_v33 }
 0x415   : > { %v1309_v24 = vadd.f32 1.0, %v1301_v28 }
 0x417   : > { %v1317_v32 = vmul.f32 %v1309_v24, %v1117_v12 }
 0x419   : > { %v1329_v36 = vpack.c.bf16 %v1317_v32, %v1316_v56 }
 0x41b   : > { %1640 = vmatprep.subr.bf16.mxu1 %v1329_v36 }
 0x41c   : > { %1641 = vmatpush3.bf16.msra.mxu1 %v1329_v36 }
 0x41d   : > { %1642 = vmatprep.subr.bf16.mxu1 %v1330_v35 }
 0x420   : > { %1643 = vmatpush3.bf16.msra.mxu1 %v1330_v35 }
 0x423   : > { %1645 = vmatmul.mubr.msk.bf16.vlgmr.msra.gmra.mrb[4].mxu1 %vm819_vm1, %v1326_v31 }
 0x4f6   : > { %v1646_v42 = vpop.f32.mrb[4].mxu1 }
 0x4f7   : > { %v1405_v41 = vadd.f32 %v1646_v42, %v1349_v38  ;;  %v1396_v63 = vpop.f32.mrb[5].mxu1 }
 0x4f8   : > { %v1397_v34 = vadd.f32 %v1396_v63, %v1339_v5  ;;  %v1647_v57 = vpop.f32.mrb[6].mxu1 }
 0x4f9   : > { %v1413_v59 = vadd.f32 %v1405_v41, %v2356_v55  ;;  %v1408_v49 = vadd.f32 %v1647_v57, %v1354_v52  ;;  %v1399_v47 = vpop.f32.mrb[7].mxu1 }
 0x4fa   : > { %v1411_v20 = vadd.f32 %v1397_v34, %v2350_v61  ;;  %v1400_v37 = vadd.f32 %v1399_v47, %v1344_v7 }
 0x4fb   : > { %1417 = vst [vmem:[%s340_s12 + $0x10] sm:$0xff] %v1413_v59  ;;  %v1414_v23 = vadd.f32 %v1408_v49, %v2361_v0 }
 0x4fc   : > { %1415 = vst [vmem:[%s340_s12] sm:$0xff] %v1411_v20  ;;  %v1412_v55 = vadd.f32 %v1400_v37, %v2353_v62 }
 0x4fd   : > { %1418 = vst [vmem:[%s340_s12 + $0x18] sm:$0xff] %v1414_v23 }
 0x4fe   : > { %1416 = vst [vmem:[%s340_s12 + $0x8] sm:$0xff] %v1412_v55 }
 0x4ff   : > { %1807 = shalt.err (!%p1804_p7)
}
 0x500   : > { %s1808_s23 = scalar_lea.hbm %s2561_s9, 512  ;;  %s1812_s27 = scalar_lea.hbm %s2625_s7, 2048 }
 0x501   : > { %p1809_p10 = scmp.ne.s32.totalorder %s2561_s9, %s1808_s23  ;;  %p1813_p13 = scmp.lt.u32.totalorder %s2561_s9, %s2625_s7 }
 0x502   : > { %p1814_p0 = scmp.lt.u32.totalorder %s1812_s27, %s1808_s23  ;;  %p1816_p2 = scmp.lt.u32.totalorder %s1808_s23, %s2561_s9 }
 0x503   : > { %p1810_p11 = pnand %p1809_p10, %p1996_p8 }
 0x504   : > { %p1815_p1 = por %p1814_p0, %p1813_p13 }
 0x505   : > { %p1811_p12 = pneg %p1810_p11 }
 0x506   : > { %p1817_p3 = por %p1816_p2, %p1815_p1 }
 0x508   : > { %p1818_p4 = pnand %p1817_p3, %p1811_p12 }
 0x50a   : > { %1821 = shalt.err (!%p1818_p4)
}
 0x50b   : > { %s1893_s10 = smov 128   ;;  %s1894_s13 = smov 256  }
 0x50c   : > { %s1895_s18 = smov 8  }
 0x50d   : > { %1648 = dma.vmem_to_hbm [thread:$0]  (%p1996_p8), %s2554_s19, 512, %s2561_s9, %s2566_s22, %s1893_s10, %s1894_s13, %s1895_s18  }
 0x50e PF: > { %p1654_p5 = scmp.ge.s32.totalorder %s1888_s8, 2  ;;  %s1449_s14 = sand.u32 1, %s1860_s24  }
 0x50f   : > { %s1450_s23 = scalar_lea.sflag [#allocation4], %s1449_s14 }
 0x510   : > { %p1651_p6 = pnand %p1654_p5, %p2000_p9 }
 0x512   : > { %1855 = dma.done.wait (!%p1651_p6), %s1450_s23, 512  }
 0x513   : > { %1857 = vsyncadd (!%p1651_p6), %s1450_s23, 4294966784  ;;  %s20_s8 = sadd.s32 1, %s1888_s8   ;;  %s2633_s15 = sld [smem:[#allocation6_spill]] }
 0x514   : > { %p17_p7 = scmp.ge.s32.totalorder %s20_s8, 6   ;;  %s2634_s24 = smov %s1864_s25 }
 0x515   : > { %s2635_s25 = smov %s1868_s26  ;;  %s2636_s26 = smov %s2008_s20 }
 0x516   : > { %s2637_s27 = smov %s1880_s29  ;;  %s2638_s28 = smov %s1884_s30 }
 0x517   : > { %s2639_s29 = smov %s2642_s11  ;;  %19 = sbr.rel (!%p17_p7) target bundleno = 5 (0x5), region = 132 }
 0x519   : > { %s2640_s30 = smov %s2633_s15 }
 0x51e   :  { %1455 = vsyncpa [#allocation4], 1 }
 0x51f   :  { %1457 = vsyncpa [#allocation4 + $0x1], 1 }

</bundles_post_ra>
